<compile_context>
chip_gen: v7x
topology: tpu7x:2x2x1
jax: 0.10.0
libtpu: 0.0.40
codegen_flags: <defaults>
</compile_context>

<pallas_src>
import functools

import numpy as np
import jax
import jax.numpy as jnp
from jax.experimental import pallas as pl
from jax.experimental.pallas import tpu as pltpu


_TAPS = tuple((kh, kw) for kh in range(3) for kw in range(3))


def _conv_layer(a, m_ref, w_ref, b_ref, col_ref, act, img_w):
    """One dilated(2), padding=2, 3x3 conv layer + activation.

    a:       (Cin, L)      f32 activation, L = N*H*W (lane-dense, image-major)
    m_ref:   (9, L)        per-tap boundary masks (1.0 inside, 0.0 = padding)
    w_ref:   (Cout, 9*Cin) weights, column index = (kh*3 + kw)*Cin + ci
    b_ref:   (Cout, 1)     bias
    col_ref: (9*Cin, L)    VMEM im2col scratch
    """
    cin, L = a.shape
    for t, (kh, kw) in enumerate(_TAPS):
        dh, dw = 2 * kh - 2, 2 * kw - 2          # tap offset (dilation=2, pad=2)
        s = dh * img_w + dw                      # flat-index shift within image
        if s == 0:
            rows = a                             # center tap: no shift, mask==1
        else:
            # XLU lane rotation; cross-row / cross-image wraparound only lands
            # on positions the mask zeroes out (the padding halo).
            rolled = pltpu.roll(a, shift=(-s) % L, axis=1)
            rows = rolled * m_ref[t:t + 1, :]
        col_ref[t * cin:(t + 1) * cin, :] = rows
    # Single MXU matmul per layer: (Cout, 9*Cin) x (9*Cin, L) -> (Cout, L),
    # lane-dense in both operands and result.
    z = jax.lax.dot_general(
        w_ref[...], col_ref[...],
        dimension_numbers=(((1,), (0,)), ((), ())),
        preferred_element_type=jnp.float32)
    z = z + b_ref[...]                           # (Cout, 1) broadcasts over lanes
    if act == "relu":
        return jnp.maximum(z, 0.0)
    return jax.nn.sigmoid(z)


def _addnet_kernel(x_ref, m_ref, w1_ref, b1_ref, w2_ref, b2_ref, w3_ref, b3_ref,
                   o_ref, col9_ref, col72_ref, *, img_w):
    """Fused AddNet forward; whole (folded) batch in one invocation."""
    x = x_ref[...]                                                       # (1, L)
    a1 = _conv_layer(x,  m_ref, w1_ref, b1_ref, col9_ref,  "relu",    img_w)  # (8, L)
    a2 = _conv_layer(a1, m_ref, w2_ref, b2_ref, col72_ref, "relu",    img_w)  # (8, L)
    a3 = _conv_layer(a2, m_ref, w3_ref, b3_ref, col72_ref, "sigmoid", img_w)  # (1, L)
    o_ref[...] = a3.astype(o_ref.dtype)


def _prep_layer(w, b):
    """HWIO (3,3,Cin,Cout) -> (Cout, 9*Cin); bias -> (Cout, 1)."""
    kh, kw, cin, cout = w.shape
    w_t = w.reshape(kh * kw * cin, cout).T.astype(jnp.float32)
    return w_t, b.reshape(cout, 1).astype(jnp.float32)


def _make_masks(n, h, w):
    """(9, N*H*W) f32 boundary masks for the 9 dilated taps (trace-time const)."""
    hh, ww = np.meshgrid(np.arange(h), np.arange(w), indexing="ij")
    rows = []
    for kh, kw in _TAPS:
        dh, dw = 2 * kh - 2, 2 * kw - 2
        m = ((hh + dh >= 0) & (hh + dh < h) & (ww + dw >= 0) & (ww + dw < w))
        rows.append(m.reshape(-1))
    per_img = np.stack(rows, 0).astype(np.float32)       # (9, H*W)
    return np.tile(per_img, (1, n))                       # (9, N*H*W)


@jax.jit
def addnet_forward(x_nchw, params):
    N, _, H, W = x_nchw.shape
    L = N * H * W
    # Cin=1, so NCHW flattens directly to a lane-dense (1, N*H*W) row.
    x_flat = x_nchw.astype(jnp.float32).reshape(1, L)
    masks = jnp.asarray(_make_masks(N, H, W))             # (9, L)
    w1, b1 = _prep_layer(*params["input"])                # (8, 9),  (8, 1)
    w2, b2 = _prep_layer(*params["conv2d"])               # (8, 72), (8, 1)
    w3, b3 = _prep_layer(*params["out"])                  # (1, 72), (1, 1)

    def full(shape):
        return pl.BlockSpec(shape, lambda n, _s=len(shape): (0,) * _s)

    out = pl.pallas_call(
        functools.partial(_addnet_kernel, img_w=W),
        out_shape=jax.ShapeDtypeStruct((1, L), jnp.float32),
        grid=(1,),                                        # batch folded into lanes
        in_specs=[
            full((1, L)),                                 # input image(s)
            full((9, L)),                                 # tap masks
            full(w1.shape), full(b1.shape),
            full(w2.shape), full(b2.shape),
            full(w3.shape), full(b3.shape),
        ],
        out_specs=full((1, L)),
        scratch_shapes=[
            pltpu.VMEM((9, L), jnp.float32),              # layer-1 im2col (Cin=1)
            pltpu.VMEM((72, L), jnp.float32),             # layer-2/3 im2col (Cin=8)
        ],
        compiler_params=pltpu.CompilerParams(
            dimension_semantics=("arbitrary",)),
    )(x_flat, masks, w1, b1, w2, b2, w3, b3)
    # TODO(synk): for large H/W, switch to row-strip grid blocks (+2-row halo)
    # so the (72, strip) col scratch stays within v7x's 64 MiB VMEM.
    return out.reshape(N, 1, H, W)                        # back to NCHW


def init_params(key):
    """Deterministic params, PyTorch-style uniform(-1/sqrt(fan_in), +)."""
    def conv_params(k, cin, cout):
        k1, k2 = jax.random.split(k)
        fan_in = cin * 3 * 3
        bound = 1.0 / jnp.sqrt(fan_in)
        w = jax.random.uniform(k1, (3, 3, cin, cout), jnp.float32, -bound, bound)
        b = jax.random.uniform(k2, (cout,), jnp.float32, -bound, bound)
        return w, b

    k1, k2, k3 = jax.random.split(key, 3)
    return {
        "input": conv_params(k1, 1, 8),
        "conv2d": conv_params(k2, 8, 8),
        "out": conv_params(k3, 8, 1),
    }


def _reference_forward(x_nchw, params):
    """Pure-JAX reference (lax.conv_general_dilated) matching AddNet.forward."""
    x = jnp.transpose(x_nchw, (0, 2, 3, 1)).astype(jnp.float32)

    def conv(a, w, b):
        y = jax.lax.conv_general_dilated(
            a, w, window_strides=(1, 1), padding=((2, 2), (2, 2)),
            rhs_dilation=(2, 2),
            dimension_numbers=("NHWC", "HWIO", "NHWC"),
            precision=jax.lax.Precision.HIGHEST)
        return y + b.reshape(1, 1, 1, -1)

    w1, b1 = params["input"]
    w2, b2 = params["conv2d"]
    w3, b3 = params["out"]
    h = jax.nn.relu(conv(x, w1, b1))
    h = jax.nn.relu(conv(h, w2, b2))
    h = jax.nn.sigmoid(conv(h, w3, b3))
    return jnp.transpose(h, (0, 3, 1, 2))


if __name__ == "__main__":
    key = jax.random.PRNGKey(0)
    k_params, k_x = jax.random.split(key)
    params = init_params(k_params)
    # NCHW input consistent with Conv2d(in_channels=1, ...)
    x = jax.random.normal(k_x, (2, 1, 16, 16), jnp.float32)

    out = addnet_forward(x, params)
    jax.block_until_ready(out)

    assert out.shape == (2, 1, 16, 16)
    assert bool(jnp.all(jnp.isfinite(out)))
    assert bool(jnp.all((out >= 0.0) & (out <= 1.0)))   # sigmoid output range

    ref = _reference_forward(x, params)
    assert bool(jnp.allclose(out, ref, atol=2e-3, rtol=2e-3)), (
        "max abs err = %f" % float(jnp.max(jnp.abs(out - ref))))

    print("KERNEL_OK")
</pallas_src>

<mosaic_0001>
module attributes {stable_mosaic.version = 11 : i64} {
  func.func @_addnet_kernel(%arg0: i32, %arg1: memref<1x512xf32, #tpu.memory_space<vmem>>, %arg2: memref<9x512xf32, #tpu.memory_space<vmem>>, %arg3: memref<8x9xf32, #tpu.memory_space<vmem>>, %arg4: memref<8x1xf32, #tpu.memory_space<vmem>>, %arg5: memref<8x72xf32, #tpu.memory_space<vmem>>, %arg6: memref<8x1xf32, #tpu.memory_space<vmem>>, %arg7: memref<1x72xf32, #tpu.memory_space<vmem>>, %arg8: memref<1x1xf32, #tpu.memory_space<vmem>>, %arg9: memref<1x512xf32, #tpu.memory_space<vmem>>, %arg10: memref<9x512xf32, #tpu.memory_space<vmem>>, %arg11: memref<72x512xf32, #tpu.memory_space<vmem>>) attributes {dimension_semantics = [#tpu.dimension_semantics<arbitrary>], iteration_bounds = array<i64: 1>, scalar_prefetch = 0 : i64, scratch_operands = 2 : i64, tpu.core_type = #tpu.core_type<tc>, window_params = [{pipeline_mode = #tpu.pipeline_mode<synchronous>, transform_indices = @transform_0, window_bounds = array<i64: 1, 512>}, {pipeline_mode = #tpu.pipeline_mode<synchronous>, transform_indices = @transform_1, window_bounds = array<i64: 9, 512>}, {pipeline_mode = #tpu.pipeline_mode<synchronous>, transform_indices = @transform_2, window_bounds = array<i64: 8, 9>}, {pipeline_mode = #tpu.pipeline_mode<synchronous>, transform_indices = @transform_3, window_bounds = array<i64: 8, 1>}, {pipeline_mode = #tpu.pipeline_mode<synchronous>, transform_indices = @transform_4, window_bounds = array<i64: 8, 72>}, {pipeline_mode = #tpu.pipeline_mode<synchronous>, transform_indices = @transform_5, window_bounds = array<i64: 8, 1>}, {pipeline_mode = #tpu.pipeline_mode<synchronous>, transform_indices = @transform_6, window_bounds = array<i64: 1, 72>}, {pipeline_mode = #tpu.pipeline_mode<synchronous>, transform_indices = @transform_7, window_bounds = array<i64: 1, 1>}, {pipeline_mode = #tpu.pipeline_mode<synchronous>, transform_indices = @transform_8, window_bounds = array<i64: 1, 512>}]} {
    %c0 = arith.constant 0 : index
    %c0_0 = arith.constant 0 : index
    %0 = vector.load %arg1[%c0, %c0_0] : memref<1x512xf32, #tpu.memory_space<vmem>>, vector<1x512xf32>
    %c34_i32 = arith.constant 34 : i32
    %1 = tpu.dynamic_rotate %0 by %c34_i32 dim 1 : vector<1x512xf32>, i32 -> vector<1x512xf32>
    %c0_1 = arith.constant 0 : index
    %c0_2 = arith.constant 0 : index
    %2 = vector.load %arg2[%c0_1, %c0_2] : memref<9x512xf32, #tpu.memory_space<vmem>>, vector<1x512xf32>
    %3 = arith.mulf %1, %2 : vector<1x512xf32>
    %c0_3 = arith.constant 0 : index
    %c0_4 = arith.constant 0 : index
    %4 = vector.load %arg10[%c0_3, %c0_4] : memref<9x512xf32, #tpu.memory_space<vmem>>, vector<1x512xf32>
    tpu.vector_store %arg10[%c0_3, %c0_4], %3 {strides = array<i32>} : memref<9x512xf32, #tpu.memory_space<vmem>>, vector<1x512xf32>,
    %c32_i32 = arith.constant 32 : i32
    %5 = tpu.dynamic_rotate %0 by %c32_i32 dim 1 : vector<1x512xf32>, i32 -> vector<1x512xf32>
    %c1 = arith.constant 1 : index
    %c0_5 = arith.constant 0 : index
    %6 = vector.load %arg2[%c1, %c0_5] : memref<9x512xf32, #tpu.memory_space<vmem>>, vector<1x512xf32>
    %7 = arith.mulf %5, %6 : vector<1x512xf32>
    %c1_6 = arith.constant 1 : index
    %c0_7 = arith.constant 0 : index
    %8 = vector.load %arg10[%c1_6, %c0_7] : memref<9x512xf32, #tpu.memory_space<vmem>>, vector<1x512xf32>
    tpu.vector_store %arg10[%c1_6, %c0_7], %7 {strides = array<i32>} : memref<9x512xf32, #tpu.memory_space<vmem>>, vector<1x512xf32>,
    %c30_i32 = arith.constant 30 : i32
    %9 = tpu.dynamic_rotate %0 by %c30_i32 dim 1 : vector<1x512xf32>, i32 -> vector<1x512xf32>
    %c2 = arith.constant 2 : index
    %c0_8 = arith.constant 0 : index
    %10 = vector.load %arg2[%c2, %c0_8] : memref<9x512xf32, #tpu.memory_space<vmem>>, vector<1x512xf32>
    %11 = arith.mulf %9, %10 : vector<1x512xf32>
    %c2_9 = arith.constant 2 : index
    %c0_10 = arith.constant 0 : index
    %12 = vector.load %arg10[%c2_9, %c0_10] : memref<9x512xf32, #tpu.memory_space<vmem>>, vector<1x512xf32>
    tpu.vector_store %arg10[%c2_9, %c0_10], %11 {strides = array<i32>} : memref<9x512xf32, #tpu.memory_space<vmem>>, vector<1x512xf32>,
    %c2_i32 = arith.constant 2 : i32
    %13 = tpu.dynamic_rotate %0 by %c2_i32 dim 1 : vector<1x512xf32>, i32 -> vector<1x512xf32>
    %c3 = arith.constant 3 : index
    %c0_11 = arith.constant 0 : index
    %14 = vector.load %arg2[%c3, %c0_11] : memref<9x512xf32, #tpu.memory_space<vmem>>, vector<1x512xf32>
    %15 = arith.mulf %13, %14 : vector<1x512xf32>
    %c3_12 = arith.constant 3 : index
    %c0_13 = arith.constant 0 : index
    %16 = vector.load %arg10[%c3_12, %c0_13] : memref<9x512xf32, #tpu.memory_space<vmem>>, vector<1x512xf32>
    tpu.vector_store %arg10[%c3_12, %c0_13], %15 {strides = array<i32>} : memref<9x512xf32, #tpu.memory_space<vmem>>, vector<1x512xf32>,
    %c4 = arith.constant 4 : index
    %c0_14 = arith.constant 0 : index
    %17 = vector.load %arg10[%c4, %c0_14] : memref<9x512xf32, #tpu.memory_space<vmem>>, vector<1x512xf32>
    tpu.vector_store %arg10[%c4, %c0_14], %0 {strides = array<i32>} : memref<9x512xf32, #tpu.memory_space<vmem>>, vector<1x512xf32>,
    %c510_i32 = arith.constant 510 : i32
    %18 = tpu.dynamic_rotate %0 by %c510_i32 dim 1 : vector<1x512xf32>, i32 -> vector<1x512xf32>
    %c5 = arith.constant 5 : index
    %c0_15 = arith.constant 0 : index
    %19 = vector.load %arg2[%c5, %c0_15] : memref<9x512xf32, #tpu.memory_space<vmem>>, vector<1x512xf32>
    %20 = arith.mulf %18, %19 : vector<1x512xf32>
    %c5_16 = arith.constant 5 : index
    %c0_17 = arith.constant 0 : index
    %21 = vector.load %arg10[%c5_16, %c0_17] : memref<9x512xf32, #tpu.memory_space<vmem>>, vector<1x512xf32>
    tpu.vector_store %arg10[%c5_16, %c0_17], %20 {strides = array<i32>} : memref<9x512xf32, #tpu.memory_space<vmem>>, vector<1x512xf32>,
    %c482_i32 = arith.constant 482 : i32
    %22 = tpu.dynamic_rotate %0 by %c482_i32 dim 1 : vector<1x512xf32>, i32 -> vector<1x512xf32>
    %c6 = arith.constant 6 : index
    %c0_18 = arith.constant 0 : index
    %23 = vector.load %arg2[%c6, %c0_18] : memref<9x512xf32, #tpu.memory_space<vmem>>, vector<1x512xf32>
    %24 = arith.mulf %22, %23 : vector<1x512xf32>
    %c6_19 = arith.constant 6 : index
    %c0_20 = arith.constant 0 : index
    %25 = vector.load %arg10[%c6_19, %c0_20] : memref<9x512xf32, #tpu.memory_space<vmem>>, vector<1x512xf32>
    tpu.vector_store %arg10[%c6_19, %c0_20], %24 {strides = array<i32>} : memref<9x512xf32, #tpu.memory_space<vmem>>, vector<1x512xf32>,
    %c480_i32 = arith.constant 480 : i32
    %26 = tpu.dynamic_rotate %0 by %c480_i32 dim 1 : vector<1x512xf32>, i32 -> vector<1x512xf32>
    %c7 = arith.constant 7 : index
    %c0_21 = arith.constant 0 : index
    %27 = vector.load %arg2[%c7, %c0_21] : memref<9x512xf32, #tpu.memory_space<vmem>>, vector<1x512xf32>
    %28 = arith.mulf %26, %27 : vector<1x512xf32>
    %c7_22 = arith.constant 7 : index
    %c0_23 = arith.constant 0 : index
    %29 = vector.load %arg10[%c7_22, %c0_23] : memref<9x512xf32, #tpu.memory_space<vmem>>, vector<1x512xf32>
    tpu.vector_store %arg10[%c7_22, %c0_23], %28 {strides = array<i32>} : memref<9x512xf32, #tpu.memory_space<vmem>>, vector<1x512xf32>,
    %c478_i32 = arith.constant 478 : i32
    %30 = tpu.dynamic_rotate %0 by %c478_i32 dim 1 : vector<1x512xf32>, i32 -> vector<1x512xf32>
    %c8 = arith.constant 8 : index
    %c0_24 = arith.constant 0 : index
    %31 = vector.load %arg2[%c8, %c0_24] : memref<9x512xf32, #tpu.memory_space<vmem>>, vector<1x512xf32>
    %32 = arith.mulf %30, %31 : vector<1x512xf32>
    %c8_25 = arith.constant 8 : index
    %c0_26 = arith.constant 0 : index
    %33 = vector.load %arg10[%c8_25, %c0_26] : memref<9x512xf32, #tpu.memory_space<vmem>>, vector<1x512xf32>
    tpu.vector_store %arg10[%c8_25, %c0_26], %32 {strides = array<i32>} : memref<9x512xf32, #tpu.memory_space<vmem>>, vector<1x512xf32>,
    %c0_27 = arith.constant 0 : index
    %c0_28 = arith.constant 0 : index
    %34 = vector.load %arg3[%c0_27, %c0_28] : memref<8x9xf32, #tpu.memory_space<vmem>>, vector<8x9xf32>
    %c0_29 = arith.constant 0 : index
    %c0_30 = arith.constant 0 : index
    %35 = vector.load %arg10[%c0_29, %c0_30] : memref<9x512xf32, #tpu.memory_space<vmem>>, vector<9x512xf32>
    %cst = arith.constant dense<0.000000e+00> : vector<8x512xf32>
    %36 = tpu.matmul %34, %35, %cst {dimension_numbers = #tpu.dot_dimension_numbers<[1], [0], [0], [1], [0, 0, 1, 1], [], []>} : vector<8x9xf32>, vector<9x512xf32>, vector<8x512xf32> -> vector<8x512xf32>
    %c0_31 = arith.constant 0 : index
    %c0_32 = arith.constant 0 : index
    %37 = vector.load %arg4[%c0_31, %c0_32] : memref<8x1xf32, #tpu.memory_space<vmem>>, vector<8x1xf32>
    %38 = vector.broadcast %37 : vector<8x1xf32> to vector<8x512xf32>
    %39 = arith.addf %36, %38 : vector<8x512xf32>
    %cst_33 = arith.constant 0.000000e+00 : f32
    %40 = vector.broadcast %cst_33 : f32 to vector<8x512xf32>
    %41 = arith.maximumf %39, %40 : vector<8x512xf32>
    %c34_i32_34 = arith.constant 34 : i32
    %42 = tpu.dynamic_rotate %41 by %c34_i32_34 dim 1 : vector<8x512xf32>, i32 -> vector<8x512xf32>
    %c0_35 = arith.constant 0 : index
    %c0_36 = arith.constant 0 : index
    %43 = vector.load %arg2[%c0_35, %c0_36] : memref<9x512xf32, #tpu.memory_space<vmem>>, vector<1x512xf32>
    %44 = vector.broadcast %43 : vector<1x512xf32> to vector<8x512xf32>
    %45 = arith.mulf %42, %44 : vector<8x512xf32>
    %c0_37 = arith.constant 0 : index
    %c0_38 = arith.constant 0 : index
    %46 = vector.load %arg11[%c0_37, %c0_38] : memref<72x512xf32, #tpu.memory_space<vmem>>, vector<8x512xf32>
    tpu.vector_store %arg11[%c0_37, %c0_38], %45 {strides = array<i32>} : memref<72x512xf32, #tpu.memory_space<vmem>>, vector<8x512xf32>,
    %c32_i32_39 = arith.constant 32 : i32
    %47 = tpu.dynamic_rotate %41 by %c32_i32_39 dim 1 : vector<8x512xf32>, i32 -> vector<8x512xf32>
    %c1_40 = arith.constant 1 : index
    %c0_41 = arith.constant 0 : index
    %48 = vector.load %arg2[%c1_40, %c0_41] : memref<9x512xf32, #tpu.memory_space<vmem>>, vector<1x512xf32>
    %49 = vector.broadcast %48 : vector<1x512xf32> to vector<8x512xf32>
    %50 = arith.mulf %47, %49 : vector<8x512xf32>
    %c8_42 = arith.constant 8 : index
    %c0_43 = arith.constant 0 : index
    %51 = vector.load %arg11[%c8_42, %c0_43] : memref<72x512xf32, #tpu.memory_space<vmem>>, vector<8x512xf32>
    tpu.vector_store %arg11[%c8_42, %c0_43], %50 {strides = array<i32>} : memref<72x512xf32, #tpu.memory_space<vmem>>, vector<8x512xf32>,
    %c30_i32_44 = arith.constant 30 : i32
    %52 = tpu.dynamic_rotate %41 by %c30_i32_44 dim 1 : vector<8x512xf32>, i32 -> vector<8x512xf32>
    %c2_45 = arith.constant 2 : index
    %c0_46 = arith.constant 0 : index
    %53 = vector.load %arg2[%c2_45, %c0_46] : memref<9x512xf32, #tpu.memory_space<vmem>>, vector<1x512xf32>
    %54 = vector.broadcast %53 : vector<1x512xf32> to vector<8x512xf32>
    %55 = arith.mulf %52, %54 : vector<8x512xf32>
    %c16 = arith.constant 16 : index
    %c0_47 = arith.constant 0 : index
    %56 = vector.load %arg11[%c16, %c0_47] : memref<72x512xf32, #tpu.memory_space<vmem>>, vector<8x512xf32>
    tpu.vector_store %arg11[%c16, %c0_47], %55 {strides = array<i32>} : memref<72x512xf32, #tpu.memory_space<vmem>>, vector<8x512xf32>,
    %c2_i32_48 = arith.constant 2 : i32
    %57 = tpu.dynamic_rotate %41 by %c2_i32_48 dim 1 : vector<8x512xf32>, i32 -> vector<8x512xf32>
    %c3_49 = arith.constant 3 : index
    %c0_50 = arith.constant 0 : index
    %58 = vector.load %arg2[%c3_49, %c0_50] : memref<9x512xf32, #tpu.memory_space<vmem>>, vector<1x512xf32>
    %59 = vector.broadcast %58 : vector<1x512xf32> to vector<8x512xf32>
    %60 = arith.mulf %57, %59 : vector<8x512xf32>
    %c24 = arith.constant 24 : index
    %c0_51 = arith.constant 0 : index
    %61 = vector.load %arg11[%c24, %c0_51] : memref<72x512xf32, #tpu.memory_space<vmem>>, vector<8x512xf32>
    tpu.vector_store %arg11[%c24, %c0_51], %60 {strides = array<i32>} : memref<72x512xf32, #tpu.memory_space<vmem>>, vector<8x512xf32>,
    %c32 = arith.constant 32 : index
    %c0_52 = arith.constant 0 : index
    %62 = vector.load %arg11[%c32, %c0_52] : memref<72x512xf32, #tpu.memory_space<vmem>>, vector<8x512xf32>
    tpu.vector_store %arg11[%c32, %c0_52], %41 {strides = array<i32>} : memref<72x512xf32, #tpu.memory_space<vmem>>, vector<8x512xf32>,
    %c510_i32_53 = arith.constant 510 : i32
    %63 = tpu.dynamic_rotate %41 by %c510_i32_53 dim 1 : vector<8x512xf32>, i32 -> vector<8x512xf32>
    %c5_54 = arith.constant 5 : index
    %c0_55 = arith.constant 0 : index
    %64 = vector.load %arg2[%c5_54, %c0_55] : memref<9x512xf32, #tpu.memory_space<vmem>>, vector<1x512xf32>
    %65 = vector.broadcast %64 : vector<1x512xf32> to vector<8x512xf32>
    %66 = arith.mulf %63, %65 : vector<8x512xf32>
    %c40 = arith.constant 40 : index
    %c0_56 = arith.constant 0 : index
    %67 = vector.load %arg11[%c40, %c0_56] : memref<72x512xf32, #tpu.memory_space<vmem>>, vector<8x512xf32>
    tpu.vector_store %arg11[%c40, %c0_56], %66 {strides = array<i32>} : memref<72x512xf32, #tpu.memory_space<vmem>>, vector<8x512xf32>,
    %c482_i32_57 = arith.constant 482 : i32
    %68 = tpu.dynamic_rotate %41 by %c482_i32_57 dim 1 : vector<8x512xf32>, i32 -> vector<8x512xf32>
    %c6_58 = arith.constant 6 : index
    %c0_59 = arith.constant 0 : index
    %69 = vector.load %arg2[%c6_58, %c0_59] : memref<9x512xf32, #tpu.memory_space<vmem>>, vector<1x512xf32>
    %70 = vector.broadcast %69 : vector<1x512xf32> to vector<8x512xf32>
    %71 = arith.mulf %68, %70 : vector<8x512xf32>
    %c48 = arith.constant 48 : index
    %c0_60 = arith.constant 0 : index
    %72 = vector.load %arg11[%c48, %c0_60] : memref<72x512xf32, #tpu.memory_space<vmem>>, vector<8x512xf32>
    tpu.vector_store %arg11[%c48, %c0_60], %71 {strides = array<i32>} : memref<72x512xf32, #tpu.memory_space<vmem>>, vector<8x512xf32>,
    %c480_i32_61 = arith.constant 480 : i32
    %73 = tpu.dynamic_rotate %41 by %c480_i32_61 dim 1 : vector<8x512xf32>, i32 -> vector<8x512xf32>
    %c7_62 = arith.constant 7 : index
    %c0_63 = arith.constant 0 : index
    %74 = vector.load %arg2[%c7_62, %c0_63] : memref<9x512xf32, #tpu.memory_space<vmem>>, vector<1x512xf32>
    %75 = vector.broadcast %74 : vector<1x512xf32> to vector<8x512xf32>
    %76 = arith.mulf %73, %75 : vector<8x512xf32>
    %c56 = arith.constant 56 : index
    %c0_64 = arith.constant 0 : index
    %77 = vector.load %arg11[%c56, %c0_64] : memref<72x512xf32, #tpu.memory_space<vmem>>, vector<8x512xf32>
    tpu.vector_store %arg11[%c56, %c0_64], %76 {strides = array<i32>} : memref<72x512xf32, #tpu.memory_space<vmem>>, vector<8x512xf32>,
    %c478_i32_65 = arith.constant 478 : i32
    %78 = tpu.dynamic_rotate %41 by %c478_i32_65 dim 1 : vector<8x512xf32>, i32 -> vector<8x512xf32>
    %c8_66 = arith.constant 8 : index
    %c0_67 = arith.constant 0 : index
    %79 = vector.load %arg2[%c8_66, %c0_67] : memref<9x512xf32, #tpu.memory_space<vmem>>, vector<1x512xf32>
    %80 = vector.broadcast %79 : vector<1x512xf32> to vector<8x512xf32>
    %81 = arith.mulf %78, %80 : vector<8x512xf32>
    %c64 = arith.constant 64 : index
    %c0_68 = arith.constant 0 : index
    %82 = vector.load %arg11[%c64, %c0_68] : memref<72x512xf32, #tpu.memory_space<vmem>>, vector<8x512xf32>
    tpu.vector_store %arg11[%c64, %c0_68], %81 {strides = array<i32>} : memref<72x512xf32, #tpu.memory_space<vmem>>, vector<8x512xf32>,
    %c0_69 = arith.constant 0 : index
    %c0_70 = arith.constant 0 : index
    %83 = vector.load %arg5[%c0_69, %c0_70] : memref<8x72xf32, #tpu.memory_space<vmem>>, vector<8x72xf32>
    %c0_71 = arith.constant 0 : index
    %c0_72 = arith.constant 0 : index
    %84 = vector.load %arg11[%c0_71, %c0_72] : memref<72x512xf32, #tpu.memory_space<vmem>>, vector<72x512xf32>
    %cst_73 = arith.constant dense<0.000000e+00> : vector<8x512xf32>
    %85 = tpu.matmul %83, %84, %cst_73 {dimension_numbers = #tpu.dot_dimension_numbers<[1], [0], [0], [1], [0, 0, 1, 1], [], []>} : vector<8x72xf32>, vector<72x512xf32>, vector<8x512xf32> -> vector<8x512xf32>
    %c0_74 = arith.constant 0 : index
    %c0_75 = arith.constant 0 : index
    %86 = vector.load %arg6[%c0_74, %c0_75] : memref<8x1xf32, #tpu.memory_space<vmem>>, vector<8x1xf32>
    %87 = vector.broadcast %86 : vector<8x1xf32> to vector<8x512xf32>
    %88 = arith.addf %85, %87 : vector<8x512xf32>
    %cst_76 = arith.constant 0.000000e+00 : f32
    %89 = vector.broadcast %cst_76 : f32 to vector<8x512xf32>
    %90 = arith.maximumf %88, %89 : vector<8x512xf32>
    %c34_i32_77 = arith.constant 34 : i32
    %91 = tpu.dynamic_rotate %90 by %c34_i32_77 dim 1 : vector<8x512xf32>, i32 -> vector<8x512xf32>
    %c0_78 = arith.constant 0 : index
    %c0_79 = arith.constant 0 : index
    %92 = vector.load %arg2[%c0_78, %c0_79] : memref<9x512xf32, #tpu.memory_space<vmem>>, vector<1x512xf32>
    %93 = vector.broadcast %92 : vector<1x512xf32> to vector<8x512xf32>
    %94 = arith.mulf %91, %93 : vector<8x512xf32>
    %c0_80 = arith.constant 0 : index
    %c0_81 = arith.constant 0 : index
    %95 = vector.load %arg11[%c0_80, %c0_81] : memref<72x512xf32, #tpu.memory_space<vmem>>, vector<8x512xf32>
    tpu.vector_store %arg11[%c0_80, %c0_81], %94 {strides = array<i32>} : memref<72x512xf32, #tpu.memory_space<vmem>>, vector<8x512xf32>,
    %c32_i32_82 = arith.constant 32 : i32
    %96 = tpu.dynamic_rotate %90 by %c32_i32_82 dim 1 : vector<8x512xf32>, i32 -> vector<8x512xf32>
    %c1_83 = arith.constant 1 : index
    %c0_84 = arith.constant 0 : index
    %97 = vector.load %arg2[%c1_83, %c0_84] : memref<9x512xf32, #tpu.memory_space<vmem>>, vector<1x512xf32>
    %98 = vector.broadcast %97 : vector<1x512xf32> to vector<8x512xf32>
    %99 = arith.mulf %96, %98 : vector<8x512xf32>
    %c8_85 = arith.constant 8 : index
    %c0_86 = arith.constant 0 : index
    %100 = vector.load %arg11[%c8_85, %c0_86] : memref<72x512xf32, #tpu.memory_space<vmem>>, vector<8x512xf32>
    tpu.vector_store %arg11[%c8_85, %c0_86], %99 {strides = array<i32>} : memref<72x512xf32, #tpu.memory_space<vmem>>, vector<8x512xf32>,
    %c30_i32_87 = arith.constant 30 : i32
    %101 = tpu.dynamic_rotate %90 by %c30_i32_87 dim 1 : vector<8x512xf32>, i32 -> vector<8x512xf32>
    %c2_88 = arith.constant 2 : index
    %c0_89 = arith.constant 0 : index
    %102 = vector.load %arg2[%c2_88, %c0_89] : memref<9x512xf32, #tpu.memory_space<vmem>>, vector<1x512xf32>
    %103 = vector.broadcast %102 : vector<1x512xf32> to vector<8x512xf32>
    %104 = arith.mulf %101, %103 : vector<8x512xf32>
    %c16_90 = arith.constant 16 : index
    %c0_91 = arith.constant 0 : index
    %105 = vector.load %arg11[%c16_90, %c0_91] : memref<72x512xf32, #tpu.memory_space<vmem>>, vector<8x512xf32>
    tpu.vector_store %arg11[%c16_90, %c0_91], %104 {strides = array<i32>} : memref<72x512xf32, #tpu.memory_space<vmem>>, vector<8x512xf32>,
    %c2_i32_92 = arith.constant 2 : i32
    %106 = tpu.dynamic_rotate %90 by %c2_i32_92 dim 1 : vector<8x512xf32>, i32 -> vector<8x512xf32>
    %c3_93 = arith.constant 3 : index
    %c0_94 = arith.constant 0 : index
    %107 = vector.load %arg2[%c3_93, %c0_94] : memref<9x512xf32, #tpu.memory_space<vmem>>, vector<1x512xf32>
    %108 = vector.broadcast %107 : vector<1x512xf32> to vector<8x512xf32>
    %109 = arith.mulf %106, %108 : vector<8x512xf32>
    %c24_95 = arith.constant 24 : index
    %c0_96 = arith.constant 0 : index
    %110 = vector.load %arg11[%c24_95, %c0_96] : memref<72x512xf32, #tpu.memory_space<vmem>>, vector<8x512xf32>
    tpu.vector_store %arg11[%c24_95, %c0_96], %109 {strides = array<i32>} : memref<72x512xf32, #tpu.memory_space<vmem>>, vector<8x512xf32>,
    %c32_97 = arith.constant 32 : index
    %c0_98 = arith.constant 0 : index
    %111 = vector.load %arg11[%c32_97, %c0_98] : memref<72x512xf32, #tpu.memory_space<vmem>>, vector<8x512xf32>
    tpu.vector_store %arg11[%c32_97, %c0_98], %90 {strides = array<i32>} : memref<72x512xf32, #tpu.memory_space<vmem>>, vector<8x512xf32>,
    %c510_i32_99 = arith.constant 510 : i32
    %112 = tpu.dynamic_rotate %90 by %c510_i32_99 dim 1 : vector<8x512xf32>, i32 -> vector<8x512xf32>
    %c5_100 = arith.constant 5 : index
    %c0_101 = arith.constant 0 : index
    %113 = vector.load %arg2[%c5_100, %c0_101] : memref<9x512xf32, #tpu.memory_space<vmem>>, vector<1x512xf32>
    %114 = vector.broadcast %113 : vector<1x512xf32> to vector<8x512xf32>
    %115 = arith.mulf %112, %114 : vector<8x512xf32>
    %c40_102 = arith.constant 40 : index
    %c0_103 = arith.constant 0 : index
    %116 = vector.load %arg11[%c40_102, %c0_103] : memref<72x512xf32, #tpu.memory_space<vmem>>, vector<8x512xf32>
    tpu.vector_store %arg11[%c40_102, %c0_103], %115 {strides = array<i32>} : memref<72x512xf32, #tpu.memory_space<vmem>>, vector<8x512xf32>,
    %c482_i32_104 = arith.constant 482 : i32
    %117 = tpu.dynamic_rotate %90 by %c482_i32_104 dim 1 : vector<8x512xf32>, i32 -> vector<8x512xf32>
    %c6_105 = arith.constant 6 : index
    %c0_106 = arith.constant 0 : index
    %118 = vector.load %arg2[%c6_105, %c0_106] : memref<9x512xf32, #tpu.memory_space<vmem>>, vector<1x512xf32>
    %119 = vector.broadcast %118 : vector<1x512xf32> to vector<8x512xf32>
    %120 = arith.mulf %117, %119 : vector<8x512xf32>
    %c48_107 = arith.constant 48 : index
    %c0_108 = arith.constant 0 : index
    %121 = vector.load %arg11[%c48_107, %c0_108] : memref<72x512xf32, #tpu.memory_space<vmem>>, vector<8x512xf32>
    tpu.vector_store %arg11[%c48_107, %c0_108], %120 {strides = array<i32>} : memref<72x512xf32, #tpu.memory_space<vmem>>, vector<8x512xf32>,
    %c480_i32_109 = arith.constant 480 : i32
    %122 = tpu.dynamic_rotate %90 by %c480_i32_109 dim 1 : vector<8x512xf32>, i32 -> vector<8x512xf32>
    %c7_110 = arith.constant 7 : index
    %c0_111 = arith.constant 0 : index
    %123 = vector.load %arg2[%c7_110, %c0_111] : memref<9x512xf32, #tpu.memory_space<vmem>>, vector<1x512xf32>
    %124 = vector.broadcast %123 : vector<1x512xf32> to vector<8x512xf32>
    %125 = arith.mulf %122, %124 : vector<8x512xf32>
    %c56_112 = arith.constant 56 : index
    %c0_113 = arith.constant 0 : index
    %126 = vector.load %arg11[%c56_112, %c0_113] : memref<72x512xf32, #tpu.memory_space<vmem>>, vector<8x512xf32>
    tpu.vector_store %arg11[%c56_112, %c0_113], %125 {strides = array<i32>} : memref<72x512xf32, #tpu.memory_space<vmem>>, vector<8x512xf32>,
    %c478_i32_114 = arith.constant 478 : i32
    %127 = tpu.dynamic_rotate %90 by %c478_i32_114 dim 1 : vector<8x512xf32>, i32 -> vector<8x512xf32>
    %c8_115 = arith.constant 8 : index
    %c0_116 = arith.constant 0 : index
    %128 = vector.load %arg2[%c8_115, %c0_116] : memref<9x512xf32, #tpu.memory_space<vmem>>, vector<1x512xf32>
    %129 = vector.broadcast %128 : vector<1x512xf32> to vector<8x512xf32>
    %130 = arith.mulf %127, %129 : vector<8x512xf32>
    %c64_117 = arith.constant 64 : index
    %c0_118 = arith.constant 0 : index
    %131 = vector.load %arg11[%c64_117, %c0_118] : memref<72x512xf32, #tpu.memory_space<vmem>>, vector<8x512xf32>
    tpu.vector_store %arg11[%c64_117, %c0_118], %130 {strides = array<i32>} : memref<72x512xf32, #tpu.memory_space<vmem>>, vector<8x512xf32>,
    %c0_119 = arith.constant 0 : index
    %c0_120 = arith.constant 0 : index
    %132 = vector.load %arg7[%c0_119, %c0_120] : memref<1x72xf32, #tpu.memory_space<vmem>>, vector<1x72xf32>
    %c0_121 = arith.constant 0 : index
    %c0_122 = arith.constant 0 : index
    %133 = vector.load %arg11[%c0_121, %c0_122] : memref<72x512xf32, #tpu.memory_space<vmem>>, vector<72x512xf32>
    %cst_123 = arith.constant dense<0.000000e+00> : vector<1x512xf32>
    %134 = tpu.matmul %132, %133, %cst_123 {dimension_numbers = #tpu.dot_dimension_numbers<[1], [0], [0], [1], [0, 0, 1, 1], [], []>} : vector<1x72xf32>, vector<72x512xf32>, vector<1x512xf32> -> vector<1x512xf32>
    %c0_124 = arith.constant 0 : index
    %c0_125 = arith.constant 0 : index
    %135 = vector.load %arg8[%c0_124, %c0_125] : memref<1x1xf32, #tpu.memory_space<vmem>>, vector<1x1xf32>
    %136 = vector.broadcast %135 : vector<1x1xf32> to vector<1x512xf32>
    %137 = arith.addf %134, %136 : vector<1x512xf32>
    %138 = arith.negf %137 : vector<1x512xf32>
    %139 = math.exp %138 : vector<1x512xf32>
    %cst_126 = arith.constant 1.000000e+00 : f32
    %140 = vector.broadcast %cst_126 : f32 to vector<1x512xf32>
    %141 = arith.addf %140, %139 : vector<1x512xf32>
    %142 = arith.divf %140, %141 : vector<1x512xf32>
    %c0_127 = arith.constant 0 : index
    %c0_128 = arith.constant 0 : index
    %143 = vector.load %arg9[%c0_127, %c0_128] : memref<1x512xf32, #tpu.memory_space<vmem>>, vector<1x512xf32>
    tpu.vector_store %arg9[%c0_127, %c0_128], %142 {strides = array<i32>} : memref<1x512xf32, #tpu.memory_space<vmem>>, vector<1x512xf32>,
    return
  }
  func.func @transform_0(%arg0: i32) -> (i32, i32) {
    %c0_i32 = arith.constant 0 : i32
    %c0_i32_0 = arith.constant 0 : i32
    %c0_i32_1 = arith.constant 0 : i32
    return %c0_i32, %c0_i32_0 : i32, i32
  }
  func.func @transform_1(%arg0: i32) -> (i32, i32) {
    %c0_i32 = arith.constant 0 : i32
    %c0_i32_0 = arith.constant 0 : i32
    %c0_i32_1 = arith.constant 0 : i32
    return %c0_i32, %c0_i32_0 : i32, i32
  }
  func.func @transform_2(%arg0: i32) -> (i32, i32) {
    %c0_i32 = arith.constant 0 : i32
    %c0_i32_0 = arith.constant 0 : i32
    %c0_i32_1 = arith.constant 0 : i32
    return %c0_i32, %c0_i32_0 : i32, i32
  }
  func.func @transform_3(%arg0: i32) -> (i32, i32) {
    %c0_i32 = arith.constant 0 : i32
    %c0_i32_0 = arith.constant 0 : i32
    %c0_i32_1 = arith.constant 0 : i32
    return %c0_i32, %c0_i32_0 : i32, i32
  }
  func.func @transform_4(%arg0: i32) -> (i32, i32) {
    %c0_i32 = arith.constant 0 : i32
    %c0_i32_0 = arith.constant 0 : i32
    %c0_i32_1 = arith.constant 0 : i32
    return %c0_i32, %c0_i32_0 : i32, i32
  }
  func.func @transform_5(%arg0: i32) -> (i32, i32) {
    %c0_i32 = arith.constant 0 : i32
    %c0_i32_0 = arith.constant 0 : i32
    %c0_i32_1 = arith.constant 0 : i32
    return %c0_i32, %c0_i32_0 : i32, i32
  }
  func.func @transform_6(%arg0: i32) -> (i32, i32) {
    %c0_i32 = arith.constant 0 : i32
    %c0_i32_0 = arith.constant 0 : i32
    %c0_i32_1 = arith.constant 0 : i32
    return %c0_i32, %c0_i32_0 : i32, i32
  }
  func.func @transform_7(%arg0: i32) -> (i32, i32) {
    %c0_i32 = arith.constant 0 : i32
    %c0_i32_0 = arith.constant 0 : i32
    %c0_i32_1 = arith.constant 0 : i32
    return %c0_i32, %c0_i32_0 : i32, i32
  }
  func.func @transform_8(%arg0: i32) -> (i32, i32) {
    %c0_i32 = arith.constant 0 : i32
    %c0_i32_0 = arith.constant 0 : i32
    %c0_i32_1 = arith.constant 0 : i32
    return %c0_i32, %c0_i32_0 : i32, i32
  }
}

</mosaic_0001>

<bundles_post_ra>
// kernel: addnet_forward.1
= control target key start
LH: loop header
LB: loop body
LE: loop exit
PB: predicated region body
PF: predicated region fallthrough
CT: control target
= control target key end

     0   :  { %v33_v0 = vlaneseq  ;;  %s2079_s29 = smov 32   ;;  %s2080_s30 = smov 30   ;;  %v2086_v12 = vmov 0.0   ;;  %v2087_v13 = vmov 0   ;;  %v2088_v15 = vmov 1966171168   ;;  %s2811_s0 = inlined_call_operand.vmem [shape: f32[1,512], index: 0, kind: input, shape index: {}]   ;;  %s2812_s3 = inlined_call_operand.vmem [shape: f32[8,1], index: 3, kind: input, shape index: {}]   ;;  %s2813_s1 = inlined_call_operand.vmem [shape: f32[9,512], index: 1, kind: input, shape index: {}]   ;;  %s2814_s2 = inlined_call_operand.vmem [shape: f32[8,9], index: 2, kind: input, shape index: {}]   ;;  %s2815_s5 = inlined_call_operand.vmem [shape: f32[8,1], index: 5, kind: input, shape index: {}]   ;;  %s2816_s4 = inlined_call_operand.vmem [shape: f32[8,72], index: 4, kind: input, shape index: {}]   ;;  %s2817_s7 = inlined_call_operand.<no memory space> [shape: f32[1,1], index: 7, kind: input, shape index: {}]   ;;  %s2818_s6 = inlined_call_operand.vmem [shape: f32[1,72], index: 6, kind: input, shape index: {}]   ;;  %s2819_s8 = inlined_call_operand.vmem [shape: f32[1,512], index: 8, kind: output, shape index: {}]  }
   0x1   :  { %v31_v1 = vld [vmem:[%s2811_s0] sm:$0xf]  ;;  %s2078_s0 = smov 34   ;;  %s2081_s9 = smov 2   ;;  %732 = vmatprep.mubr.f32.mxu0 %v2086_v12  ;;  %803 = vmatprep.mubr.f32.mxu1 %v2086_v12  ;;  %v101_v16 = vunpack.c.l.s4 %v2088_v15  ;;  %vm655_vm9 = vcmask 1040384   ;;  %vm2089_vm10 = vmmov 1  }
   0x2   :  { %v2139_v2 = vshrl.u32 %v33_v0, 7  ;;  %vm2142_vm0 = vcmp.lt.s32.totalorder %v33_v0, 512  ;;  %s2082_s10 = smov 126   ;;  %s2083_s11 = smov 98   ;;  %2060 = vset.pattern.permute.xlu0 %v2087_v13  ;;  %v645_v14 = vld [vmem:[%s2812_s3] sm:$0xff]  ;;  %2061 = vset.pattern.permute.xlu1 %v2087_v13  ;;  %v2202_v17 = vand.u32 127, %v33_v0  ;;  %vm2375_vm11 = vmpackc.low %vm655_vm9, %vm2089_vm10 }
   0x3   :  { %346 = vst.msk [vmem:[#allocation2 + $0x4] ss:$8 sm:$0xf] %vm2142_vm0, %v31_v1  ;;  %s2084_s12 = smov 96   ;;  %s2085_s13 = smov 94   ;;  %v102_v19 = vunpack.c.0.s8 %v101_v16  ;;  %vm651_vm12 = vcmask 72704  }
   0x4   :  { %v2149_v4 = vsub.s32 0, %v2139_v2  ;;  %v2152_v5 = vsub.s32 2, %v2139_v2  ;;  %v2155_v6 = vsub.s32 3, %v2139_v2  ;;  %v2158_v7 = vsub.s32 1, %v2139_v2 }
   0x5   :  { %v68_v18 = vld [vmem:[%s2813_s1] ss:$8 sm:$0xf]  ;;  %vm63_vm1 = vcmp.lt.s32.totalorder %v2202_v17, 34  ;;  %v2213_v26 = vsub.s32 %v102_v19, %v2139_v2  ;;  %vm137_vm2 = vcmp.lt.s32.totalorder %v2202_v17, 32  ;;  %vm209_vm3 = vcmp.lt.s32.totalorder %v2202_v17, 30 }
   0x6   :  { %v44_v8 = vrot.slane %v31_v1, %v2152_v5  ;;  %v36_v9 = vrot.slane %v31_v1, %v2149_v4  ;;  %v48_v10 = vrot.slane %v31_v1, %v2155_v6  ;;  %v40_v11 = vrot.slane %v31_v1, %v2158_v7  ;;  %v1937_v37 = vld [vmem:[%s2813_s1 + $0x1] ss:$8 sm:$0xf]  ;;  %v1938_v60 = vld [vmem:[%s2813_s1 + $0x2] ss:$8 sm:$0xf] }
   0x7   :  { %v73_v22 = vrot.slane %v68_v18, %v2149_v4  ;;  %v85_v23 = vrot.slane %v68_v18, %v2155_v6  ;;  %v77_v24 = vrot.slane %v68_v18, %v2158_v7  ;;  %v81_v25 = vrot.slane %v68_v18, %v2152_v5 }
   0x8   :  { %57 = vrot.lane.b32.xlu1 %v44_v8, %s2078_s0  ;;  %53 = vrot.lane.b32.xlu0 %v36_v9, %s2078_s0  ;;  %v152_v42 = vrot.slane %v1937_v37, %v2158_v7  ;;  %v148_v43 = vrot.slane %v1937_v37, %v2149_v4  ;;  %v156_v44 = vrot.slane %v1937_v37, %v2152_v5  ;;  %vm281_vm4 = vcmp.lt.s32.totalorder %v2202_v17, 2 }
   0x9   :  { %v160_v48 = vrot.slane %v1937_v37, %v2155_v6  ;;  %v224_v1 = vrot.slane %v1938_v60, %v2158_v7  ;;  %v220_v2 = vrot.slane %v1938_v60, %v2149_v4  ;;  %v232_v13 = vrot.slane %v1938_v60, %v2155_v6 }
   0xa   :  { %vm356_vm5 = vcmp.lt.s32.totalorder %v2202_v17, 126  ;;  %vm428_vm6 = vcmp.lt.s32.totalorder %v2202_v17, 98  ;;  %vm500_vm7 = vcmp.lt.s32.totalorder %v2202_v17, 96  ;;  %vm572_vm8 = vcmp.lt.s32.totalorder %v2202_v17, 94 }
   0xb   :  { %vm1197_vm13 = vcmask 588800  }
   0xc   :  { %59 = vrot.lane.b32.xlu1 %v48_v10, %s2078_s0  ;;  %55 = vrot.lane.b32.xlu0 %v40_v11, %s2078_s0 }
  0x10   :  { %131 = vrot.lane.b32.xlu1 %v40_v11, %s2079_s29  ;;  %129 = vrot.lane.b32.xlu0 %v36_v9, %s2079_s29 }
  0x14   :  { %135 = vrot.lane.b32.xlu1 %v48_v10, %s2079_s29  ;;  %133 = vrot.lane.b32.xlu0 %v44_v8, %s2079_s29 }
  0x18   :  { %203 = vrot.lane.b32.xlu1 %v40_v11, %s2080_s30  ;;  %201 = vrot.lane.b32.xlu0 %v36_v9, %s2080_s30 }
  0x1c   :  { %207 = vrot.lane.b32.xlu1 %v48_v10, %s2080_s30  ;;  %205 = vrot.lane.b32.xlu0 %v44_v8, %s2080_s30 }
  0x20   :  { %275 = vrot.lane.b32.xlu1 %v40_v11, %s2081_s9  ;;  %273 = vrot.lane.b32.xlu0 %v36_v9, %s2081_s9 }
  0x24   :  { %279 = vrot.lane.b32.xlu1 %v48_v10, %s2081_s9  ;;  %277 = vrot.lane.b32.xlu0 %v44_v8, %s2081_s9 }
  0x28   :  { %350 = vrot.lane.b32.xlu1 %v40_v11, %s2082_s10  ;;  %348 = vrot.lane.b32.xlu0 %v36_v9, %s2082_s10 }
  0x2c   :  { %354 = vrot.lane.b32.xlu1 %v48_v10, %s2082_s10  ;;  %352 = vrot.lane.b32.xlu0 %v44_v8, %s2082_s10 }
  0x30   :  { %422 = vrot.lane.b32.xlu1 %v40_v11, %s2083_s11  ;;  %420 = vrot.lane.b32.xlu0 %v36_v9, %s2083_s11 }
  0x34   :  { %426 = vrot.lane.b32.xlu1 %v48_v10, %s2083_s11  ;;  %424 = vrot.lane.b32.xlu0 %v44_v8, %s2083_s11 }
  0x38   :  { %494 = vrot.lane.b32.xlu1 %v40_v11, %s2084_s12  ;;  %492 = vrot.lane.b32.xlu0 %v36_v9, %s2084_s12 }
  0x3c   :  { %498 = vrot.lane.b32.xlu1 %v48_v10, %s2084_s12  ;;  %496 = vrot.lane.b32.xlu0 %v44_v8, %s2084_s12 }
  0x40   :  { %566 = vrot.lane.b32.xlu1 %v40_v11, %s2085_s13  ;;  %564 = vrot.lane.b32.xlu0 %v36_v9, %s2085_s13 }
  0x44   :  { %570 = vrot.lane.b32.xlu1 %v48_v10, %s2085_s13  ;;  %568 = vrot.lane.b32.xlu0 %v44_v8, %s2085_s13  ;;  %v228_v8 = vrot.slane %v1938_v60, %v2152_v5 }
  0x48   :  { %648 = vperm.xlu0 %2060, %v645_v14  }
  0x7a   :  { %v58_v20 = vpop.permute.xlu1 %57  ;;  %v54_v21 = vpop.permute.xlu0 %53 }
  0x7e   :  { %v60_v27 = vpop.permute.xlu1 %59  ;;  %v56_v28 = vpop.permute.xlu0 %55 }
  0x7f   :  { %v64_v29 = vsel %vm63_vm1, %v58_v20, %v60_v27  ;;  %v67_v30 = vsel %vm63_vm1, %v60_v27, %v54_v21  ;;  %v65_v31 = vsel %vm63_vm1, %v56_v28, %v58_v20  ;;  %v66_v32 = vsel %vm63_vm1, %v54_v21, %v56_v28  ;;  %v1939_v27 = vld [vmem:[%s2813_s1 + $0x3] ss:$8 sm:$0xf] }
  0x80   :  { %v90_v33 = vmul.f32 %v73_v22, %v67_v30  ;;  %v93_v34 = vmul.f32 %v85_v23, %v64_v29  ;;  %v91_v35 = vmul.f32 %v77_v24, %v66_v32  ;;  %v92_v36 = vmul.f32 %v81_v25, %v65_v31 }
  0x81   :  { %v296_v32 = vrot.slane %v1939_v27, %v2158_v7 }
  0x82   :  { %v98_v38 = vcombine.low %v90_v33, %v91_v35  ;;  %v99_v39 = vcombine.low %v92_v36, %v93_v34  ;;  %v132_v40 = vpop.permute.xlu1 %131  ;;  %v130_v41 = vpop.permute.xlu0 %129  ;;  %v292_v33 = vrot.slane %v1939_v27, %v2149_v4  ;;  %v300_v34 = vrot.slane %v1939_v27, %v2152_v5 }
  0x83   :  { %v140_v47 = vsel %vm137_vm2, %v130_v41, %v132_v40 }
  0x84   :  { %v106_v45 = vrot.slane %v98_v38, %v2213_v26  ;;  %v113_v46 = vrot.slane %v99_v39, %v2213_v26  ;;  %v166_v52 = vmul.f32 %v152_v42, %v140_v47  ;;  %v304_v38 = vrot.slane %v1939_v27, %v2155_v6 }
  0x86   :  { %v114_v49 = vcombine.low %v106_v45, %v113_v46  ;;  %v136_v50 = vpop.permute.xlu1 %135  ;;  %v134_v51 = vpop.permute.xlu0 %133 }
  0x87   :  { %v141_v53 = vsel %vm137_vm2, %v136_v50, %v130_v41  ;;  %v138_v54 = vsel %vm137_vm2, %v134_v51, %v136_v50  ;;  %v139_v55 = vsel %vm137_vm2, %v132_v40, %v134_v51  ;;  %v1940_v50 = vld [vmem:[%s2813_s1 + $0x5] ss:$8 sm:$0xf] }
  0x88   :  { %v121_v56 = vrot.slane %v114_v49, %v2213_v26  ;;  %v165_v57 = vmul.f32 %v148_v43, %v141_v53  ;;  %v167_v58 = vmul.f32 %v156_v44, %v139_v55  ;;  %v168_v59 = vmul.f32 %v160_v48, %v138_v54 }
  0x89   :  { %v367_v55 = vrot.slane %v1940_v50, %v2149_v4 }
  0x8a   :  { %127 = vst.msk [vmem:[#allocation2] ss:$8 sm:$0xf] %vm2142_vm0, %v121_v56  ;;  %v173_v61 = vcombine.low %v165_v57, %v166_v52  ;;  %v174_v62 = vcombine.low %v167_v58, %v168_v59  ;;  %v204_v63 = vpop.permute.xlu1 %203  ;;  %v202_v0 = vpop.permute.xlu0 %201  ;;  %v379_v56 = vrot.slane %v1940_v50, %v2155_v6  ;;  %v371_v57 = vrot.slane %v1940_v50, %v2158_v7 }
  0x8b   :  { %v212_v11 = vsel %vm209_vm3, %v202_v0, %v204_v63 }
  0x8c   :  { %v181_v9 = vrot.slane %v173_v61, %v2213_v26  ;;  %v188_v10 = vrot.slane %v174_v62, %v2213_v26  ;;  %v238_v18 = vmul.f32 %v224_v1, %v212_v11  ;;  %v375_v61 = vrot.slane %v1940_v50, %v2152_v5 }
  0x8e   :  { %v189_v14 = vcombine.low %v181_v9, %v188_v10  ;;  %v208_v15 = vpop.permute.xlu1 %207  ;;  %v206_v16 = vpop.permute.xlu0 %205 }
  0x8f   :  { %v213_v19 = vsel %vm209_vm3, %v208_v15, %v202_v0  ;;  %v210_v20 = vsel %vm209_vm3, %v206_v16, %v208_v15  ;;  %v211_v21 = vsel %vm209_vm3, %v204_v63, %v206_v16  ;;  %v1941_v15 = vld [vmem:[%s2813_s1 + $0x6] ss:$8 sm:$0xf] }
  0x90   :  { %v196_v22 = vrot.slane %v189_v14, %v2213_v26  ;;  %v237_v23 = vmul.f32 %v220_v2, %v213_v19  ;;  %v239_v24 = vmul.f32 %v228_v8, %v211_v21  ;;  %v240_v25 = vmul.f32 %v232_v13, %v210_v20 }
  0x91   :  { %v439_v21 = vrot.slane %v1941_v15, %v2149_v4 }
  0x92   :  { %199 = vst.msk [vmem:[#allocation2 + $0x1] ss:$8 sm:$0xf] %vm2142_vm0, %v196_v22  ;;  %v245_v28 = vcombine.low %v237_v23, %v238_v18  ;;  %v246_v29 = vcombine.low %v239_v24, %v240_v25  ;;  %v276_v30 = vpop.permute.xlu1 %275  ;;  %v274_v31 = vpop.permute.xlu0 %273  ;;  %v451_v22 = vrot.slane %v1941_v15, %v2155_v6  ;;  %v443_v23 = vrot.slane %v1941_v15, %v2158_v7 }
  0x93   :  { %v284_v37 = vsel %vm281_vm4, %v274_v31, %v276_v30 }
  0x94   :  { %v253_v35 = vrot.slane %v245_v28, %v2213_v26  ;;  %v260_v36 = vrot.slane %v246_v29, %v2213_v26  ;;  %v310_v42 = vmul.f32 %v296_v32, %v284_v37  ;;  %v447_v28 = vrot.slane %v1941_v15, %v2152_v5 }
  0x96   :  { %v261_v39 = vcombine.low %v253_v35, %v260_v36  ;;  %v280_v40 = vpop.permute.xlu1 %279  ;;  %v278_v41 = vpop.permute.xlu0 %277 }
  0x97   :  { %v285_v43 = vsel %vm281_vm4, %v280_v40, %v274_v31  ;;  %v282_v44 = vsel %vm281_vm4, %v278_v41, %v280_v40  ;;  %v283_v45 = vsel %vm281_vm4, %v276_v30, %v278_v41  ;;  %v1942_v40 = vld [vmem:[%s2813_s1 + $0x7] ss:$8 sm:$0xf] }
  0x98   :  { %v268_v46 = vrot.slane %v261_v39, %v2213_v26  ;;  %v309_v47 = vmul.f32 %v292_v33, %v285_v43  ;;  %v311_v48 = vmul.f32 %v300_v34, %v283_v45  ;;  %v312_v49 = vmul.f32 %v304_v38, %v282_v44 }
  0x99   :  { %v511_v45 = vrot.slane %v1942_v40, %v2149_v4 }
  0x9a   :  { %271 = vst.msk [vmem:[#allocation2 + $0x2] ss:$8 sm:$0xf] %vm2142_vm0, %v268_v46  ;;  %v317_v51 = vcombine.low %v309_v47, %v310_v42  ;;  %v318_v52 = vcombine.low %v311_v48, %v312_v49  ;;  %v351_v53 = vpop.permute.xlu1 %350  ;;  %v349_v54 = vpop.permute.xlu0 %348  ;;  %v523_v46 = vrot.slane %v1942_v40, %v2155_v6  ;;  %v515_v47 = vrot.slane %v1942_v40, %v2158_v7 }
  0x9b   :  { %v359_v60 = vsel %vm356_vm5, %v349_v54, %v351_v53 }
  0x9c   :  { %v325_v58 = vrot.slane %v317_v51, %v2213_v26  ;;  %v332_v59 = vrot.slane %v318_v52, %v2213_v26  ;;  %v384_v1 = vmul.f32 %v367_v55, %v359_v60  ;;  %v519_v51 = vrot.slane %v1942_v40, %v2152_v5 }
  0x9e   :  { %v333_v62 = vcombine.low %v325_v58, %v332_v59  ;;  %v355_v63 = vpop.permute.xlu1 %354  ;;  %v353_v0 = vpop.permute.xlu0 %352 }
  0x9f   :  { %v360_v2 = vsel %vm356_vm5, %v355_v63, %v349_v54  ;;  %v357_v8 = vsel %vm356_vm5, %v353_v0, %v355_v63  ;;  %v358_v9 = vsel %vm356_vm5, %v351_v53, %v353_v0  ;;  %v1943_v63 = vld [vmem:[%s2813_s1 + $0x20] ss:$8 sm:$0xf] }
  0xa0   :  { %v340_v10 = vrot.slane %v333_v62, %v2213_v26  ;;  %v387_v11 = vmul.f32 %v379_v56, %v360_v2  ;;  %v385_v13 = vmul.f32 %v371_v57, %v358_v9  ;;  %v386_v14 = vmul.f32 %v375_v61, %v357_v8 }
  0xa1   :  { %v583_v9 = vrot.slane %v1943_v63, %v2149_v4 }
  0xa2   :  { %343 = vst.msk [vmem:[#allocation2 + $0x3] ss:$8 sm:$0xf] %vm2142_vm0, %v340_v10  ;;  %v392_v16 = vcombine.low %v384_v1, %v385_v13  ;;  %v393_v18 = vcombine.low %v386_v14, %v387_v11  ;;  %v423_v19 = vpop.permute.xlu1 %422  ;;  %v421_v20 = vpop.permute.xlu0 %420  ;;  %v595_v10 = vrot.slane %v1943_v63, %v2155_v6  ;;  %v587_v11 = vrot.slane %v1943_v63, %v2158_v7 }
  0xa3   :  { %v431_v27 = vsel %vm428_vm6, %v421_v20, %v423_v19 }
  0xa4   :  { %v400_v24 = vrot.slane %v392_v16, %v2213_v26  ;;  %v407_v25 = vrot.slane %v393_v18, %v2213_v26  ;;  %v456_v32 = vmul.f32 %v439_v21, %v431_v27  ;;  %v591_v16 = vrot.slane %v1943_v63, %v2152_v5  ;;  %v1191_v63 = vld [vmem:[%s2815_s5] sm:$0xff] }
  0xa6   :  { %v408_v29 = vcombine.low %v400_v24, %v407_v25  ;;  %v427_v30 = vpop.permute.xlu1 %426  ;;  %v425_v31 = vpop.permute.xlu0 %424 }
  0xa7   :  { %v432_v33 = vsel %vm428_vm6, %v427_v30, %v421_v20  ;;  %v429_v34 = vsel %vm428_vm6, %v425_v31, %v427_v30  ;;  %v430_v35 = vsel %vm428_vm6, %v423_v19, %v425_v31 }
  0xa8   :  { %v415_v36 = vrot.slane %v408_v29, %v2213_v26  ;;  %v459_v37 = vmul.f32 %v451_v22, %v432_v33  ;;  %v457_v38 = vmul.f32 %v443_v23, %v430_v35  ;;  %v458_v39 = vmul.f32 %v447_v28, %v429_v34 }
  0xaa   :  { %418 = vst.msk [vmem:[#allocation2 + $0x5] ss:$8 sm:$0xf] %vm2142_vm0, %v415_v36  ;;  %v464_v41 = vcombine.low %v456_v32, %v457_v38  ;;  %v465_v42 = vcombine.low %v458_v39, %v459_v37  ;;  %v495_v43 = vpop.permute.xlu1 %494  ;;  %v493_v44 = vpop.permute.xlu0 %492 }
  0xab   :  { %v503_v50 = vsel %vm500_vm7, %v493_v44, %v495_v43 }
  0xac   :  { %v472_v48 = vrot.slane %v464_v41, %v2213_v26  ;;  %v479_v49 = vrot.slane %v465_v42, %v2213_v26  ;;  %v528_v55 = vmul.f32 %v511_v45, %v503_v50 }
  0xae   :  { %v480_v52 = vcombine.low %v472_v48, %v479_v49  ;;  %v499_v53 = vpop.permute.xlu1 %498  ;;  %v497_v54 = vpop.permute.xlu0 %496  ;;  %v636_v49 = vld [vmem:[%s2814_s2] sm:$0xff] }
  0xaf   :  { %v504_v56 = vsel %vm500_vm7, %v499_v53, %v493_v44  ;;  %v501_v57 = vsel %vm500_vm7, %v497_v54, %v499_v53  ;;  %v502_v58 = vsel %vm500_vm7, %v495_v43, %v497_v54 }
  0xb0   :  { %v487_v59 = vrot.slane %v480_v52, %v2213_v26  ;;  %v531_v60 = vmul.f32 %v523_v46, %v504_v56  ;;  %v529_v61 = vmul.f32 %v515_v47, %v502_v58  ;;  %v530_v62 = vmul.f32 %v519_v51, %v501_v57 }
  0xb2   :  { %490 = vst.msk [vmem:[#allocation2 + $0x6] ss:$8 sm:$0xf] %vm2142_vm0, %v487_v59  ;;  %v536_v0 = vcombine.low %v528_v55, %v529_v61  ;;  %v537_v1 = vcombine.low %v530_v62, %v531_v60  ;;  %v567_v2 = vpop.permute.xlu1 %566  ;;  %v565_v8 = vpop.permute.xlu0 %564 }
  0xb3   :  { %v575_v15 = vsel %vm572_vm8, %v565_v8, %v567_v2 }
  0xb4   :  { %v544_v13 = vrot.slane %v536_v0, %v2213_v26  ;;  %v551_v14 = vrot.slane %v537_v1, %v2213_v26  ;;  %v600_v21 = vmul.f32 %v583_v9, %v575_v15  ;;  %v826_v9 = vld [vmem:[%s2813_s1] ss:$8 sm:$0xf] }
  0xb6   :  { %v552_v18 = vcombine.low %v544_v13, %v551_v14  ;;  %v571_v19 = vpop.permute.xlu1 %570  ;;  %v569_v20 = vpop.permute.xlu0 %568  ;;  %v835_v14 = vrot.slane %v826_v9, %v2158_v7 }
  0xb7   :  { %v576_v22 = vsel %vm572_vm8, %v571_v19, %v565_v8  ;;  %v573_v23 = vsel %vm572_vm8, %v569_v20, %v571_v19  ;;  %v574_v24 = vsel %vm572_vm8, %v567_v2, %v569_v20 }
  0xb8   :  { %v559_v25 = vrot.slane %v552_v18, %v2213_v26  ;;  %v603_v27 = vmul.f32 %v595_v10, %v576_v22  ;;  %v601_v28 = vmul.f32 %v587_v11, %v574_v24  ;;  %v602_v29 = vmul.f32 %v591_v16, %v573_v23  ;;  %v1950_v10 = vld [vmem:[%s2813_s1 + $0x1] ss:$8 sm:$0xf] }
  0xb9   :  { %v877_v15 = vrot.slane %v1950_v10, %v2158_v7  ;;  %v831_v18 = vrot.slane %v826_v9, %v2149_v4  ;;  %v881_v22 = vrot.slane %v1950_v10, %v2152_v5  ;;  %v873_v24 = vrot.slane %v1950_v10, %v2149_v4 }
  0xba   :  { %562 = vst.msk [vmem:[#allocation2 + $0x7] ss:$8 sm:$0xf] %vm2142_vm0, %v559_v25  ;;  %v608_v30 = vcombine.low %v600_v21, %v601_v28  ;;  %v609_v31 = vcombine.low %v602_v29, %v603_v27  ;;  %v843_v21 = vrot.slane %v826_v9, %v2155_v6  ;;  %v885_v29 = vrot.slane %v1950_v10, %v2155_v6 }
  0xbc   :  { %v616_v32 = vrot.slane %v608_v30, %v2213_v26  ;;  %v623_v33 = vrot.slane %v609_v31, %v2213_v26  ;;  %v839_v30 = vrot.slane %v826_v9, %v2152_v5  ;;  %v1953_v9 = vld [vmem:[%s2813_s1 + $0x5] ss:$8 sm:$0xf] }
  0xbe   :  { %v624_v34 = vcombine.low %v616_v32, %v623_v33 }
  0xc0   :  { %v631_v35 = vrot.slane %v624_v34, %v2213_v26 }
  0xc1   :  { %v638_v37 = vld [vmem:[#allocation2 + $0x8] sm:$0xff]  ;;  %v640_v38 = vld [vmem:[#allocation2 + $0x18] sm:$0xff]  ;;  %v637_v39 = vld [vmem:[#allocation2] sm:$0xff] }
  0xc2   :  { %634 = vst.msk [vmem:[#allocation2 + $0x20] ss:$8 sm:$0xf] %vm2142_vm0, %v631_v35  ;;  %v639_v46 = vld [vmem:[#allocation2 + $0x10] sm:$0xff] }
  0xc7   :  { %v649_v50 = vpop.permute.xlu0 %648 }
  0xc9   :  { %v642_v40 = vld [vmem:[#allocation2 + $0x28] sm:$0x1]  ;;  %v644_v41 = vld [vmem:[#allocation2 + $0x38] sm:$0x1]  ;;  %v641_v42 = vld [vmem:[#allocation2 + $0x20] sm:$0x1] }
  0xca   :  { %v1972_v43 = vpack.c.bf16 %v642_v40, %v638_v37  ;;  %v1978_v44 = vpack.c.bf16 %v644_v41, %v640_v38  ;;  %v1975_v45 = vpack.c.bf16 %v641_v42, %v637_v39  ;;  %v643_v47 = vld [vmem:[#allocation2 + $0x30] sm:$0x1] }
  0xcb   :  { %v1981_v48 = vpack.c.bf16 %v643_v47, %v639_v46 }
  0xcc   :  { %1974 = vmatprep.subr.msk.bf16.mxu0 %vm2375_vm11, %v1972_v43  ;;  %1980 = vmatprep.subr.msk.bf16.mxu1 %vm2375_vm11, %v1978_v44 }
  0xcd   :  { %1977 = vmatpush1.bf16.msk.msra.mxu0 %vm2375_vm11, %v1975_v45  ;;  %1983 = vmatpush1.bf16.msk.msra.mxu1 %vm2375_vm11, %v1981_v48 }
  0xd0   :  { %1946 = vmatmul.mubr.msk.f32.vlgmr.msra.gmra.mrb[0].mxu0 %vm651_vm12, %v636_v49  ;;  %1949 = vmatmul.mubr.msk.f32.vlgmr.msra.gmra.mrb[0].mxu1 %vm651_vm12, %v636_v49 }
  0xd1   :  { %1265 = vmatprep.mubr.f32.mxu0 %v2086_v12  ;;  %1336 = vmatprep.mubr.f32.mxu1 %v2086_v12 }
 0x1a3   :  { %v734_v51 = vpop.f32.mrb[0].mxu0  ;;  %v805_v52 = vpop.f32.mrb[0].mxu1 }
 0x1a4   :  { %v735_v53 = vadd.f32 %v734_v51, %v649_v50  ;;  %v806_v54 = vadd.f32 %v805_v52, %v649_v50  ;;  %v736_v55 = vpop.f32.mrb[1].mxu0  ;;  %v807_v56 = vpop.f32.mrb[1].mxu1  ;;  %v1952_v51 = vld [vmem:[%s2813_s1 + $0x3] ss:$8 sm:$0xf] }
 0x1a5   :  { %v737_v59 = vadd.f32 %v736_v55, %v649_v50  ;;  %v808_v61 = vadd.f32 %v807_v56, %v649_v50  ;;  %v1951_v50 = vld [vmem:[%s2813_s1 + $0x2] ss:$8 sm:$0xf]  ;;  %v961_v55 = vrot.slane %v1952_v51, %v2158_v7 }
 0x1a6   :  { %v2392_v57 = vmax.f32 %v735_v53, 0.0  ;;  %v2394_v58 = vmax.f32 %v806_v54, 0.0  ;;  %v919_v54 = vrot.slane %v1951_v50, %v2158_v7 }
 0x1a7   :  { %v2400_v60 = vmax.f32 %v737_v59, 0.0  ;;  %v2406_v62 = vmax.f32 %v808_v61, 0.0  ;;  %v915_v59 = vrot.slane %v1951_v50, %v2149_v4 }
 0x1a8   :  { %818 = vrot.lane.b32.xlu0 %v2394_v58, %s2078_s0  ;;  %814 = vrot.lane.b32.xlu1 %v2392_v57, %s2078_s0 }
 0x1ac   :  { %856 = vrot.lane.b32.xlu0 %v2392_v57, %s2079_s29  ;;  %816 = vrot.lane.b32.xlu1 %v2400_v60, %s2078_s0 }
 0x1b0   :  { %860 = vrot.lane.b32.xlu0 %v2394_v58, %s2079_s29  ;;  %820 = vrot.lane.b32.xlu1 %v2406_v62, %s2078_s0 }
 0x1b4   :  { %898 = vrot.lane.b32.xlu0 %v2392_v57, %s2080_s30  ;;  %858 = vrot.lane.b32.xlu1 %v2400_v60, %s2079_s29 }
 0x1b8   :  { %902 = vrot.lane.b32.xlu0 %v2394_v58, %s2080_s30  ;;  %862 = vrot.lane.b32.xlu1 %v2406_v62, %s2079_s29 }
 0x1bc   :  { %940 = vrot.lane.b32.xlu0 %v2392_v57, %s2081_s9  ;;  %900 = vrot.lane.b32.xlu1 %v2400_v60, %s2080_s30 }
 0x1c0   :  { %944 = vrot.lane.b32.xlu0 %v2394_v58, %s2081_s9  ;;  %904 = vrot.lane.b32.xlu1 %v2406_v62, %s2080_s30 }
 0x1c4   :  { %986 = vrot.lane.b32.xlu0 %v2392_v57, %s2082_s10  ;;  %942 = vrot.lane.b32.xlu1 %v2400_v60, %s2081_s9 }
 0x1c8   :  { %990 = vrot.lane.b32.xlu0 %v2394_v58, %s2082_s10  ;;  %946 = vrot.lane.b32.xlu1 %v2406_v62, %s2081_s9 }
 0x1cc   :  { %1028 = vrot.lane.b32.xlu0 %v2392_v57, %s2083_s11  ;;  %988 = vrot.lane.b32.xlu1 %v2400_v60, %s2082_s10 }
 0x1d0   :  { %1032 = vrot.lane.b32.xlu0 %v2394_v58, %s2083_s11  ;;  %992 = vrot.lane.b32.xlu1 %v2406_v62, %s2082_s10 }
 0x1d4   :  { %1070 = vrot.lane.b32.xlu0 %v2392_v57, %s2084_s12  ;;  %1030 = vrot.lane.b32.xlu1 %v2400_v60, %s2083_s11 }
 0x1d8   :  { %1074 = vrot.lane.b32.xlu0 %v2394_v58, %s2084_s12  ;;  %1034 = vrot.lane.b32.xlu1 %v2406_v62, %s2083_s11 }
 0x1dc   :  { %1112 = vrot.lane.b32.xlu0 %v2392_v57, %s2085_s13  ;;  %1072 = vrot.lane.b32.xlu1 %v2400_v60, %s2084_s12 }
 0x1e0   :  { %1116 = vrot.lane.b32.xlu0 %v2394_v58, %s2085_s13  ;;  %1076 = vrot.lane.b32.xlu1 %v2406_v62, %s2084_s12 }
 0x1e4   :  { %1194 = vperm.xlu0 %2060, %v1191_v63   ;;  %1114 = vrot.lane.b32.xlu1 %v2400_v60, %s2085_s13 }
 0x1e8   :  { %1118 = vrot.lane.b32.xlu1 %v2406_v62, %s2085_s13 }
 0x21a   :  { %v819_v0 = vpop.permute.xlu0 %818  ;;  %v815_v1 = vpop.permute.xlu1 %814 }
 0x21e   :  { %v857_v2 = vpop.permute.xlu0 %856  ;;  %v817_v8 = vpop.permute.xlu1 %816 }
 0x21f   :  { %v824_v16 = vsel %vm63_vm1, %v815_v1, %v817_v8  ;;  %v823_v33 = vsel %vm63_vm1, %v817_v8, %v819_v0  ;;  %v957_v8 = vrot.slane %v1952_v51, %v2149_v4 }
 0x220   :  { %v849_v25 = vmul.f32 %v835_v14, %v824_v16  ;;  %v850_v44 = vmul.f32 %v839_v30, %v823_v33  ;;  %v969_v14 = vrot.slane %v1952_v51, %v2155_v6 }
 0x222   :  { %v861_v11 = vpop.permute.xlu0 %860  ;;  %v821_v13 = vpop.permute.xlu1 %820 }
 0x223   :  { %v822_v31 = vsel %vm63_vm1, %v819_v0, %v821_v13  ;;  %v825_v32 = vsel %vm63_vm1, %v821_v13, %v815_v1  ;;  %v927_v0 = vrot.slane %v1951_v50, %v2155_v6  ;;  %v965_v1 = vrot.slane %v1952_v51, %v2152_v5 }
 0x224   :  { %v848_v40 = vmul.f32 %v831_v18, %v825_v32  ;;  %v851_v41 = vmul.f32 %v843_v21, %v822_v31 }
 0x226   :  { %v899_v19 = vpop.permute.xlu0 %898  ;;  %v859_v20 = vpop.permute.xlu1 %858 }
 0x227   :  { %v866_v23 = vsel %vm137_vm2, %v857_v2, %v859_v20  ;;  %v865_v27 = vsel %vm137_vm2, %v859_v20, %v861_v11 }
 0x228   :  { %v891_v28 = vmul.f32 %v877_v15, %v866_v23  ;;  %v892_v37 = vmul.f32 %v881_v22, %v865_v27  ;;  %v923_v15 = vrot.slane %v1951_v50, %v2152_v5 }
 0x22a   :  { %v903_v34 = vpop.permute.xlu0 %902  ;;  %v863_v35 = vpop.permute.xlu1 %862  ;;  %v1984_v36 = vpack.c.bf16 %v891_v28, %v849_v25  ;;  %v2002_v49 = vpack.c.bf16 %v892_v37, %v850_v44  ;;  %v1015_v44 = vrot.slane %v1953_v9, %v2155_v6 }
 0x22b   :  { %v864_v38 = vsel %vm137_vm2, %v861_v11, %v863_v35  ;;  %v867_v39 = vsel %vm137_vm2, %v863_v35, %v857_v2 }
 0x22c   :  { %v890_v42 = vmul.f32 %v873_v24, %v867_v39  ;;  %v893_v43 = vmul.f32 %v885_v29, %v864_v38  ;;  %1985 = vmatprep.subr.bf16.mxu0 %v1984_v36  ;;  %v1003_v24 = vrot.slane %v1953_v9, %v2149_v4  ;;  %v1007_v29 = vrot.slane %v1953_v9, %v2158_v7 }
 0x22e   :  { %v1986_v45 = vpack.c.bf16 %v890_v42, %v848_v40  ;;  %v941_v46 = vpop.permute.xlu0 %940  ;;  %v901_v47 = vpop.permute.xlu1 %900  ;;  %v2000_v48 = vpack.c.bf16 %v893_v43, %v851_v41  ;;  %v1011_v41 = vrot.slane %v1953_v9, %v2152_v5 }
 0x22f   :  { %v908_v56 = vsel %vm209_vm3, %v899_v19, %v901_v47  ;;  %v907_v20 = vsel %vm209_vm3, %v901_v47, %v903_v34 }
 0x230   :  { %1987 = vmatpush1.bf16.msra.mxu0 %v1986_v45  ;;  %2001 = vmatprep.subr.bf16.mxu1 %v2000_v48  ;;  %v933_v10 = vmul.f32 %v919_v54, %v908_v56  ;;  %v934_v33 = vmul.f32 %v923_v15, %v907_v20  ;;  %v1955_v56 = vld [vmem:[%s2813_s1 + $0x7] ss:$8 sm:$0xf] }
 0x231   :  { %2003 = vmatpush1.bf16.msra.mxu1 %v2002_v49  ;;  %v1099_v15 = vrot.slane %v1955_v56, %v2155_v6 }
 0x232   :  { %v945_v52 = vpop.permute.xlu0 %944  ;;  %v905_v53 = vpop.permute.xlu1 %904 }
 0x233   :  { %v906_v16 = vsel %vm209_vm3, %v903_v34, %v905_v53  ;;  %v909_v18 = vsel %vm209_vm3, %v905_v53, %v899_v19 }
 0x234   :  { %v932_v30 = vmul.f32 %v915_v59, %v909_v18  ;;  %v935_v31 = vmul.f32 %v927_v0, %v906_v16  ;;  %v1087_v0 = vrot.slane %v1955_v56, %v2149_v4 }
 0x236   :  { %v987_v61 = vpop.permute.xlu0 %986  ;;  %v943_v63 = vpop.permute.xlu1 %942 }
 0x237   :  { %v950_v2 = vsel %vm281_vm4, %v941_v46, %v943_v63  ;;  %v949_v11 = vsel %vm281_vm4, %v943_v63, %v945_v52 }
 0x238   :  { %v975_v13 = vmul.f32 %v961_v55, %v950_v2  ;;  %v976_v25 = vmul.f32 %v965_v1, %v949_v11 }
 0x23a   :  { %v991_v21 = vpop.permute.xlu0 %990  ;;  %v947_v22 = vpop.permute.xlu1 %946  ;;  %v1988_v23 = vpack.c.bf16 %v975_v13, %v933_v10  ;;  %v2006_v38 = vpack.c.bf16 %v976_v25, %v934_v33 }
 0x23b   :  { %v948_v27 = vsel %vm281_vm4, %v945_v52, %v947_v22  ;;  %v951_v28 = vsel %vm281_vm4, %v947_v22, %v941_v46 }
 0x23c   :  { %v974_v19 = vmul.f32 %v957_v8, %v951_v28  ;;  %v977_v32 = vmul.f32 %v969_v14, %v948_v27  ;;  %1989 = vmatprep.subr.bf16.mxu0 %v1988_v23  ;;  %v1095_v14 = vrot.slane %v1955_v56, %v2152_v5  ;;  %v1956_v23 = vld [vmem:[%s2813_s1 + $0x20] ss:$8 sm:$0xf] }
 0x23e   :  { %v1990_v34 = vpack.c.bf16 %v974_v19, %v932_v30  ;;  %v1029_v35 = vpop.permute.xlu0 %1028  ;;  %v989_v36 = vpop.permute.xlu1 %988  ;;  %v2004_v37 = vpack.c.bf16 %v977_v32, %v935_v31  ;;  %v1129_v19 = vrot.slane %v1956_v23, %v2149_v4  ;;  %v1133_v32 = vrot.slane %v1956_v23, %v2158_v7 }
 0x23f   :  { %v995_v39 = vsel %vm356_vm5, %v989_v36, %v991_v21  ;;  %v996_v40 = vsel %vm356_vm5, %v987_v61, %v989_v36 }
 0x240   :  { %v1020_v42 = vmul.f32 %v1003_v24, %v996_v40  ;;  %v1021_v43 = vmul.f32 %v1007_v29, %v995_v39  ;;  %1991 = vmatpush1.bf16.msra.mxu0 %v1990_v34  ;;  %2005 = vmatprep.subr.bf16.mxu1 %v2004_v37 }
 0x241   :  { %2007 = vmatpush1.bf16.msra.mxu1 %v2006_v38 }
 0x242   :  { %v1994_v45 = vpack.c.bf16 %v1020_v42, %v2392_v57  ;;  %v1033_v46 = vpop.permute.xlu0 %1032  ;;  %v993_v47 = vpop.permute.xlu1 %992  ;;  %v1992_v48 = vpack.c.bf16 %v1021_v43, %v2400_v60  ;;  %v1954_v60 = vld [vmem:[%s2813_s1 + $0x6] ss:$8 sm:$0xf] }
 0x243   :  { %v994_v49 = vsel %vm356_vm5, %v991_v21, %v993_v47  ;;  %v997_v50 = vsel %vm356_vm5, %v993_v47, %v987_v61  ;;  %v1045_v63 = vrot.slane %v1954_v60, %v2149_v4  ;;  %v1053_v8 = vrot.slane %v1954_v60, %v2152_v5  ;;  %v1154_v47 = vld [vmem:[%s2816_s4] sm:$0xff] }
 0x244   :  { %v1022_v51 = vmul.f32 %v1011_v41, %v994_v49  ;;  %v1023_v52 = vmul.f32 %v1015_v44, %v997_v50  ;;  %1993 = vmatprep.subr.bf16.mxu0 %v1992_v48  ;;  %v1057_v9 = vrot.slane %v1954_v60, %v2155_v6 }
 0x245   :  { %1995 = vmatpush1.bf16.msra.mxu0 %v1994_v45  ;;  %v1137_v45 = vrot.slane %v1956_v23, %v2152_v5 }
 0x246   :  { %v2010_v53 = vpack.c.bf16 %v1022_v51, %v2394_v58  ;;  %v1071_v54 = vpop.permute.xlu0 %1070  ;;  %v1031_v55 = vpop.permute.xlu1 %1030  ;;  %v2008_v57 = vpack.c.bf16 %v1023_v52, %v2406_v62  ;;  %v1049_v58 = vrot.slane %v1954_v60, %v2158_v7  ;;  %v1091_v62 = vrot.slane %v1955_v56, %v2158_v7 }
 0x247   :  { %v1037_v1 = vsel %vm428_vm6, %v1031_v55, %v1033_v46  ;;  %v1038_v2 = vsel %vm428_vm6, %v1029_v35, %v1031_v55 }
 0x248   :  { %2009 = vmatprep.subr.bf16.mxu1 %v2008_v57  ;;  %v1062_v16 = vmul.f32 %v1045_v63, %v1038_v2  ;;  %v1063_v18 = vmul.f32 %v1049_v58, %v1037_v1  ;;  %v13_v1 = vstv %s2817_s7 }
 0x249   :  { %2011 = vmatpush1.bf16.msra.mxu1 %v2010_v53  ;;  %14 = vst [vmem:[#allocation4] sm:$0x1] %v13_v1 }
 0x24a   :  { %v1075_v59 = vpop.permute.xlu0 %1074  ;;  %v1035_v61 = vpop.permute.xlu1 %1034 }
 0x24b   :  { %v1036_v24 = vsel %vm428_vm6, %v1033_v46, %v1035_v61  ;;  %v1039_v25 = vsel %vm428_vm6, %v1035_v61, %v1029_v35  ;;  %v1141_v46 = vrot.slane %v1956_v23, %v2155_v6 }
 0x24c   :  { %v1064_v33 = vmul.f32 %v1053_v8, %v1036_v24  ;;  %v1065_v34 = vmul.f32 %v1057_v9, %v1039_v25 }
 0x24e   :  { %v1073_v10 = vpop.permute.xlu1 %1072  ;;  %v1113_v20 = vpop.permute.xlu0 %1112 }
 0x24f   :  { %v1079_v11 = vsel %vm500_vm7, %v1073_v10, %v1075_v59  ;;  %v1080_v13 = vsel %vm500_vm7, %v1071_v54, %v1073_v10  ;;  %v1359_v10 = vld [vmem:[%s2813_s1] ss:$8 sm:$0xf] }
 0x250   :  { %v1104_v21 = vmul.f32 %v1087_v0, %v1080_v13  ;;  %v1105_v22 = vmul.f32 %v1091_v62, %v1079_v11  ;;  %v1724_v2 = vld [vmem:[#allocation4] sm:$0x1]  ;;  %v1959_v13 = vld [vmem:[%s2813_s1 + $0x1] ss:$8 sm:$0xf]  ;;  %v1376_v23 = vrot.slane %v1359_v10, %v2155_v6 }
 0x251   :  { %v1414_v25 = vrot.slane %v1959_v13, %v2152_v5 }
 0x252   :  { %v1998_v27 = vpack.c.bf16 %v1104_v21, %v1062_v16  ;;  %v1077_v28 = vpop.permute.xlu1 %1076  ;;  %v1996_v29 = vpack.c.bf16 %v1105_v22, %v1063_v18  ;;  %v1117_v35 = vpop.permute.xlu0 %1116  ;;  %v1410_v16 = vrot.slane %v1959_v13, %v2158_v7  ;;  %v1364_v22 = vrot.slane %v1359_v10, %v2149_v4 }
 0x253   :  { %v1078_v30 = vsel %vm500_vm7, %v1075_v59, %v1077_v28  ;;  %v1081_v31 = vsel %vm500_vm7, %v1077_v28, %v1071_v54 }
 0x254   :  { %v1106_v36 = vmul.f32 %v1095_v14, %v1078_v30  ;;  %v1107_v37 = vmul.f32 %v1099_v15, %v1081_v31  ;;  %1997 = vmatprep.subr.bf16.mxu0 %v1996_v29  ;;  %v1368_v15 = vrot.slane %v1359_v10, %v2158_v7  ;;  %v1406_v29 = vrot.slane %v1959_v13, %v2149_v4 }
 0x255   :  { %1999 = vmatpush1.bf16.msra.mxu0 %v1998_v27  ;;  %v1418_v30 = vrot.slane %v1959_v13, %v2155_v6  ;;  %v1372_v31 = vrot.slane %v1359_v10, %v2152_v5 }
 0x256   :  { %v2014_v38 = vpack.c.bf16 %v1106_v36, %v1064_v33  ;;  %v1115_v39 = vpop.permute.xlu1 %1114  ;;  %v2012_v40 = vpack.c.bf16 %v1107_v37, %v1065_v34 }
 0x257   :  { %v1121_v41 = vsel %vm572_vm8, %v1115_v39, %v1117_v35  ;;  %v1122_v42 = vsel %vm572_vm8, %v1113_v20, %v1115_v39 }
 0x258   :  { %v1146_v43 = vmul.f32 %v1129_v19, %v1122_v42  ;;  %v1147_v44 = vmul.f32 %v1133_v32, %v1121_v41  ;;  %2013 = vmatprep.subr.bf16.mxu1 %v2012_v40 }
 0x259   :  { %2015 = vmatpush1.bf16.msra.mxu1 %v2014_v38 }
 0x25a   :  { %1217 = vmatprep.subr.mxu0 %v1147_v44  ;;  %v1119_v48 = vpop.permute.xlu1 %1118 }
 0x25b   :  { %v1120_v49 = vsel %vm572_vm8, %v1117_v35, %v1119_v48  ;;  %v1123_v50 = vsel %vm572_vm8, %v1119_v48, %v1113_v20  ;;  %1218 = vmatpush1.msra.mxu0 %v1146_v43 }
 0x25c   :  { %v1148_v51 = vmul.f32 %v1137_v45, %v1120_v49  ;;  %v1149_v52 = vmul.f32 %v1141_v46, %v1123_v50  ;;  %1957 = vmatmul.mubr.msk.f32.vlgmr.msra.gmra.mrb[2].mxu0 %vm1197_vm13, %v1154_v47 }
 0x25d   :  { %1801 = vmatprep.mubr.f32.mxu0 %v2086_v12 }
 0x25e   :  { %1288 = vmatprep.subr.mxu1 %v1149_v52 }
 0x25f   :  { %1289 = vmatpush1.msra.mxu1 %v1148_v51  ;;  %v1960_v51 = vld [vmem:[%s2813_s1 + $0x2] ss:$8 sm:$0xf] }
 0x260   :  { %1958 = vmatmul.mubr.msk.f32.vlgmr.msra.gmra.mrb[2].mxu1 %vm1197_vm13, %v1154_v47  ;;  %v1456_v13 = vrot.slane %v1960_v51, %v2152_v5 }
 0x261   :  { %1872 = vmatprep.mubr.f32.mxu1 %v2086_v12 }
 0x263   :  { %v1195_v53 = vpop.permute.xlu0 %1194 }
 0x32f   :  { %v1267_v54 = vpop.f32.mrb[2].mxu0 }
 0x330   :  { %v1268_v55 = vadd.f32 %v1267_v54, %v1195_v53  ;;  %v1269_v57 = vpop.f32.mrb[3].mxu0 }
 0x331   :  { %v1270_v60 = vadd.f32 %v1269_v57, %v1195_v53 }
 0x332   :  { %v2598_v56 = vmax.f32 %v1268_v55, 0.0  ;;  %v1452_v55 = vrot.slane %v1960_v51, %v2158_v7 }
 0x333   :  { %v2600_v59 = vmax.f32 %v1270_v60, 0.0  ;;  %v1338_v61 = vpop.f32.mrb[2].mxu1 }
 0x334   :  { %v1339_v63 = vadd.f32 %v1338_v61, %v1195_v53  ;;  %1347 = vrot.lane.b32.xlu1 %v2598_v56, %s2078_s0  ;;  %v1340_v58 = vpop.f32.mrb[3].mxu1 }
 0x335   :  { %v1341_v0 = vadd.f32 %v1340_v58, %v1195_v53  ;;  %1349 = vrot.lane.b32.xlu0 %v2600_v59, %s2078_s0  ;;  %v1961_v53 = vld [vmem:[%s2813_s1 + $0x3] ss:$8 sm:$0xf]  ;;  %v1448_v58 = vrot.slane %v1960_v51, %v2149_v4 }
 0x336   :  { %v2606_v12 = vmax.f32 %v1339_v63, 0.0  ;;  %v1494_v57 = vrot.slane %v1961_v53, %v2158_v7  ;;  %v1490_v10 = vrot.slane %v1961_v53, %v2149_v4 }
 0x337   :  { %v2608_v62 = vmax.f32 %v1341_v0, 0.0  ;;  %v1460_v0 = vrot.slane %v1960_v51, %v2155_v6 }
 0x338   :  { %1351 = vrot.lane.b32.xlu1 %v2606_v12, %s2078_s0 }
 0x339   :  { %1353 = vrot.lane.b32.xlu0 %v2608_v62, %s2078_s0 }
 0x33c   :  { %1389 = vrot.lane.b32.xlu1 %v2598_v56, %s2079_s29 }
 0x33d   :  { %1391 = vrot.lane.b32.xlu0 %v2600_v59, %s2079_s29 }
 0x340   :  { %1393 = vrot.lane.b32.xlu1 %v2606_v12, %s2079_s29 }
 0x341   :  { %1395 = vrot.lane.b32.xlu0 %v2608_v62, %s2079_s29 }
 0x344   :  { %1431 = vrot.lane.b32.xlu1 %v2598_v56, %s2080_s30 }
 0x345   :  { %1433 = vrot.lane.b32.xlu0 %v2600_v59, %s2080_s30 }
 0x348   :  { %1435 = vrot.lane.b32.xlu1 %v2606_v12, %s2080_s30 }
 0x349   :  { %1437 = vrot.lane.b32.xlu0 %v2608_v62, %s2080_s30 }
 0x34c   :  { %1473 = vrot.lane.b32.xlu1 %v2598_v56, %s2081_s9 }
 0x34d   :  { %1475 = vrot.lane.b32.xlu0 %v2600_v59, %s2081_s9 }
 0x350   :  { %1477 = vrot.lane.b32.xlu1 %v2606_v12, %s2081_s9 }
 0x351   :  { %1479 = vrot.lane.b32.xlu0 %v2608_v62, %s2081_s9 }
 0x354   :  { %1519 = vrot.lane.b32.xlu1 %v2598_v56, %s2082_s10 }
 0x355   :  { %1521 = vrot.lane.b32.xlu0 %v2600_v59, %s2082_s10 }
 0x358   :  { %1523 = vrot.lane.b32.xlu1 %v2606_v12, %s2082_s10 }
 0x359   :  { %1525 = vrot.lane.b32.xlu0 %v2608_v62, %s2082_s10 }
 0x35c   :  { %1561 = vrot.lane.b32.xlu1 %v2598_v56, %s2083_s11 }
 0x35d   :  { %1563 = vrot.lane.b32.xlu0 %v2600_v59, %s2083_s11 }
 0x360   :  { %1565 = vrot.lane.b32.xlu1 %v2606_v12, %s2083_s11 }
 0x361   :  { %1567 = vrot.lane.b32.xlu0 %v2608_v62, %s2083_s11 }
 0x364   :  { %1603 = vrot.lane.b32.xlu1 %v2598_v56, %s2084_s12 }
 0x365   :  { %1605 = vrot.lane.b32.xlu0 %v2600_v59, %s2084_s12 }
 0x368   :  { %1607 = vrot.lane.b32.xlu1 %v2606_v12, %s2084_s12 }
 0x369   :  { %1609 = vrot.lane.b32.xlu0 %v2608_v62, %s2084_s12 }
 0x36c   :  { %1645 = vrot.lane.b32.xlu1 %v2598_v56, %s2085_s13 }
 0x36d   :  { %1647 = vrot.lane.b32.xlu0 %v2600_v59, %s2085_s13 }
 0x370   :  { %1649 = vrot.lane.b32.xlu1 %v2606_v12, %s2085_s13 }
 0x371   :  { %1651 = vrot.lane.b32.xlu0 %v2608_v62, %s2085_s13 }
 0x374   :  { %1727 = vperm.xlu1 %2061, %v1724_v2   ;;  %v1498_v2 = vrot.slane %v1961_v53, %v2152_v5 }
 0x3a6   :  { %v1348_v8 = vpop.permute.xlu1 %1347 }
 0x3a7   :  { %v1350_v9 = vpop.permute.xlu0 %1349 }
 0x3a8   :  { %v1357_v18 = vsel %vm63_vm1, %v1348_v8, %v1350_v9 }
 0x3a9   :  { %v1382_v27 = vmul.f32 %v1368_v15, %v1357_v18 }
 0x3aa   :  { %v1352_v11 = vpop.permute.xlu1 %1351 }
 0x3ab   :  { %v1354_v14 = vpop.permute.xlu0 %1353  ;;  %v1356_v34 = vsel %vm63_vm1, %v1350_v9, %v1352_v11 }
 0x3ac   :  { %v1355_v19 = vsel %vm63_vm1, %v1352_v11, %v1354_v14  ;;  %v1358_v32 = vsel %vm63_vm1, %v1354_v14, %v1348_v8  ;;  %v1383_v45 = vmul.f32 %v1372_v31, %v1356_v34  ;;  %v1502_v11 = vrot.slane %v1961_v53, %v2155_v6 }
 0x3ad   :  { %v1381_v41 = vmul.f32 %v1364_v22, %v1358_v32  ;;  %v1384_v42 = vmul.f32 %v1376_v23, %v1355_v19 }
 0x3ae   :  { %v1390_v20 = vpop.permute.xlu1 %1389 }
 0x3af   :  { %v1392_v21 = vpop.permute.xlu0 %1391 }
 0x3b0   :  { %v1399_v24 = vsel %vm137_vm2, %v1390_v20, %v1392_v21 }
 0x3b1   :  { %v1424_v28 = vmul.f32 %v1410_v16, %v1399_v24 }
 0x3b2   :  { %v1394_v33 = vpop.permute.xlu1 %1393 }
 0x3b3   :  { %v1398_v36 = vsel %vm137_vm2, %v1392_v21, %v1394_v33  ;;  %v1396_v37 = vpop.permute.xlu0 %1395  ;;  %v2016_v35 = vpack.c.bf16 %v1424_v28, %v1382_v27  ;;  %v1962_v27 = vld [vmem:[%s2813_s1 + $0x5] ss:$8 sm:$0xf] }
 0x3b4   :  { %v1425_v38 = vmul.f32 %v1414_v25, %v1398_v36  ;;  %v1397_v39 = vsel %vm137_vm2, %v1394_v33, %v1396_v37  ;;  %v1400_v40 = vsel %vm137_vm2, %v1396_v37, %v1390_v20  ;;  %v1536_v34 = vrot.slane %v1962_v27, %v2149_v4 }
 0x3b5   :  { %v1423_v43 = vmul.f32 %v1406_v29, %v1400_v40  ;;  %v1426_v44 = vmul.f32 %v1418_v30, %v1397_v39  ;;  %2017 = vmatprep.subr.bf16.mxu0 %v2016_v35  ;;  %v1540_v39 = vrot.slane %v1962_v27, %v2158_v7  ;;  %v1544_v40 = vrot.slane %v1962_v27, %v2152_v5 }
 0x3b6   :  { %v1432_v46 = vpop.permute.xlu1 %1431  ;;  %v2034_v50 = vpack.c.bf16 %v1425_v38, %v1383_v45 }
 0x3b7   :  { %v2018_v47 = vpack.c.bf16 %v1423_v43, %v1381_v41  ;;  %v1434_v48 = vpop.permute.xlu0 %1433  ;;  %v2032_v49 = vpack.c.bf16 %v1426_v44, %v1384_v42  ;;  %v1548_v41 = vrot.slane %v1962_v27, %v2155_v6 }
 0x3b8   :  { %v1441_v60 = vsel %vm209_vm3, %v1432_v46, %v1434_v48 }
 0x3b9   :  { %2019 = vmatpush1.bf16.msra.mxu0 %v2018_v47  ;;  %2033 = vmatprep.subr.bf16.mxu1 %v2032_v49  ;;  %v1466_v8 = vmul.f32 %v1452_v55, %v1441_v60 }
 0x3ba   :  { %2035 = vmatpush1.bf16.msra.mxu1 %v2034_v50  ;;  %v1436_v52 = vpop.permute.xlu1 %1435 }
 0x3bb   :  { %v1438_v54 = vpop.permute.xlu0 %1437  ;;  %v1440_v18 = vsel %vm209_vm3, %v1434_v48, %v1436_v52 }
 0x3bc   :  { %v1439_v14 = vsel %vm209_vm3, %v1436_v52, %v1438_v54  ;;  %v1442_v15 = vsel %vm209_vm3, %v1438_v54, %v1432_v46  ;;  %v1467_v19 = vmul.f32 %v1456_v13, %v1440_v18 }
 0x3bd   :  { %v1465_v28 = vmul.f32 %v1448_v58, %v1442_v15  ;;  %v1468_v29 = vmul.f32 %v1460_v0, %v1439_v14 }
 0x3be   :  { %v1474_v61 = vpop.permute.xlu1 %1473 }
 0x3bf   :  { %v1476_v63 = vpop.permute.xlu0 %1475 }
 0x3c0   :  { %v1483_v1 = vsel %vm281_vm4, %v1474_v61, %v1476_v63 }
 0x3c1   :  { %v1508_v9 = vmul.f32 %v1494_v57, %v1483_v1 }
 0x3c2   :  { %v1478_v16 = vpop.permute.xlu1 %1477 }
 0x3c3   :  { %v1482_v20 = vsel %vm281_vm4, %v1476_v63, %v1478_v16  ;;  %v1480_v21 = vpop.permute.xlu0 %1479  ;;  %v2020_v22 = vpack.c.bf16 %v1508_v9, %v1466_v8  ;;  %v1963_v63 = vld [vmem:[%s2813_s1 + $0x6] ss:$8 sm:$0xf] }
 0x3c4   :  { %v1509_v23 = vmul.f32 %v1498_v2, %v1482_v20  ;;  %v1481_v24 = vsel %vm281_vm4, %v1478_v16, %v1480_v21  ;;  %v1484_v25 = vsel %vm281_vm4, %v1480_v21, %v1474_v61  ;;  %v1582_v58 = vrot.slane %v1963_v63, %v2158_v7 }
 0x3c5   :  { %v1507_v30 = vmul.f32 %v1490_v10, %v1484_v25  ;;  %v1510_v31 = vmul.f32 %v1502_v11, %v1481_v24  ;;  %2021 = vmatprep.subr.bf16.mxu0 %v2020_v22  ;;  %v1586_v2 = vrot.slane %v1963_v63, %v2152_v5  ;;  %v1590_v11 = vrot.slane %v1963_v63, %v2155_v6 }
 0x3c6   :  { %v1520_v32 = vpop.permute.xlu1 %1519  ;;  %v2038_v35 = vpack.c.bf16 %v1509_v23, %v1467_v19 }
 0x3c7   :  { %v2022_v33 = vpack.c.bf16 %v1507_v30, %v1465_v28  ;;  %v1522_v36 = vpop.permute.xlu0 %1521  ;;  %v2036_v37 = vpack.c.bf16 %v1510_v31, %v1468_v29 }
 0x3c8   :  { %v1529_v38 = vsel %vm356_vm5, %v1520_v32, %v1522_v36 }
 0x3c9   :  { %2023 = vmatpush1.bf16.msra.mxu0 %v2022_v33  ;;  %2037 = vmatprep.subr.bf16.mxu1 %v2036_v37  ;;  %v1553_v43 = vmul.f32 %v1536_v34, %v1529_v38  ;;  %v1965_v33 = vld [vmem:[%s2813_s1 + $0x20] ss:$8 sm:$0xf] }
 0x3ca   :  { %2039 = vmatpush1.bf16.msra.mxu1 %v2038_v35  ;;  %v1524_v42 = vpop.permute.xlu1 %1523 }
 0x3cb   :  { %v1528_v44 = vsel %vm356_vm5, %v1522_v36, %v1524_v42  ;;  %v1526_v45 = vpop.permute.xlu0 %1525  ;;  %v2026_v53 = vpack.c.bf16 %v1553_v43, %v2598_v56 }
 0x3cc   :  { %v1554_v46 = vmul.f32 %v1540_v39, %v1528_v44  ;;  %v1527_v47 = vsel %vm356_vm5, %v1524_v42, %v1526_v45  ;;  %v1530_v48 = vsel %vm356_vm5, %v1526_v45, %v1520_v32  ;;  %v1666_v39 = vrot.slane %v1965_v33, %v2158_v7 }
 0x3cd   :  { %v1555_v49 = vmul.f32 %v1544_v40, %v1527_v47  ;;  %v1556_v50 = vmul.f32 %v1548_v41, %v1530_v48  ;;  %v1662_v40 = vrot.slane %v1965_v33, %v2149_v4  ;;  %v1670_v41 = vrot.slane %v1965_v33, %v2152_v5 }
 0x3ce   :  { %v1562_v51 = vpop.permute.xlu1 %1561  ;;  %v2024_v52 = vpack.c.bf16 %v1554_v46, %v2600_v59  ;;  %v1964_v59 = vld [vmem:[%s2813_s1 + $0x7] ss:$8 sm:$0xf]  ;;  %v1674_v42 = vrot.slane %v1965_v33, %v2155_v6 }
 0x3cf   :  { %v2042_v54 = vpack.c.bf16 %v1555_v49, %v2606_v12  ;;  %v1564_v55 = vpop.permute.xlu0 %1563  ;;  %v2040_v57 = vpack.c.bf16 %v1556_v50, %v2608_v62  ;;  %v1578_v12 = vrot.slane %v1963_v63, %v2149_v4  ;;  %v1620_v62 = vrot.slane %v1964_v59, %v2149_v4 }
 0x3d0   :  { %2025 = vmatprep.subr.bf16.mxu0 %v2024_v52  ;;  %v1571_v1 = vsel %vm428_vm6, %v1562_v51, %v1564_v55  ;;  %v1624_v9 = vrot.slane %v1964_v59, %v2158_v7  ;;  %v1628_v13 = vrot.slane %v1964_v59, %v2152_v5  ;;  %v1632_v14 = vrot.slane %v1964_v59, %v2155_v6  ;;  %v1687_v6 = vld [vmem:[%s2818_s6] sm:$0x1] }
 0x3d1   :  { %2027 = vmatpush1.bf16.msra.mxu0 %v2026_v53  ;;  %2041 = vmatprep.subr.bf16.mxu1 %v2040_v57  ;;  %v1595_v20 = vmul.f32 %v1578_v12, %v1571_v1 }
 0x3d2   :  { %2043 = vmatpush1.bf16.msra.mxu1 %v2042_v54  ;;  %v1566_v60 = vpop.permute.xlu1 %1565 }
 0x3d3   :  { %v1568_v61 = vpop.permute.xlu0 %1567  ;;  %v1570_v10 = vsel %vm428_vm6, %v1564_v55, %v1566_v60 }
 0x3d4   :  { %v1569_v15 = vsel %vm428_vm6, %v1566_v60, %v1568_v61  ;;  %v1572_v16 = vsel %vm428_vm6, %v1568_v61, %v1562_v51  ;;  %v1596_v24 = vmul.f32 %v1582_v58, %v1570_v10 }
 0x3d5   :  { %v1597_v29 = vmul.f32 %v1586_v2, %v1569_v15  ;;  %v1598_v30 = vmul.f32 %v1590_v11, %v1572_v16 }
 0x3d6   :  { %v1604_v56 = vpop.permute.xlu1 %1603 }
 0x3d7   :  { %v1606_v0 = vpop.permute.xlu0 %1605 }
 0x3d8   :  { %v1613_v8 = vsel %vm500_vm7, %v1604_v56, %v1606_v0 }
 0x3d9   :  { %v1637_v21 = vmul.f32 %v1620_v62, %v1613_v8 }
 0x3da   :  { %v1608_v18 = vpop.permute.xlu1 %1607 }
 0x3db   :  { %v1612_v22 = vsel %vm500_vm7, %v1606_v0, %v1608_v18  ;;  %v1610_v23 = vpop.permute.xlu0 %1609  ;;  %v2030_v36 = vpack.c.bf16 %v1637_v21, %v1595_v20 }
 0x3dc   :  { %v1638_v25 = vmul.f32 %v1624_v9, %v1612_v22  ;;  %v1611_v27 = vsel %vm500_vm7, %v1608_v18, %v1610_v23  ;;  %v1614_v28 = vsel %vm500_vm7, %v1610_v23, %v1604_v56 }
 0x3dd   :  { %v1639_v31 = vmul.f32 %v1628_v13, %v1611_v27  ;;  %v1640_v19 = vmul.f32 %v1632_v14, %v1614_v28 }
 0x3de   :  { %v1646_v32 = vpop.permute.xlu1 %1645  ;;  %v2028_v34 = vpack.c.bf16 %v1638_v25, %v1596_v24 }
 0x3df   :  { %v2046_v37 = vpack.c.bf16 %v1639_v31, %v1597_v29  ;;  %v1648_v35 = vpop.permute.xlu0 %1647  ;;  %v2044_v38 = vpack.c.bf16 %v1640_v19, %v1598_v30 }
 0x3e0   :  { %2029 = vmatprep.subr.bf16.mxu0 %v2028_v34  ;;  %v1655_v43 = vsel %vm572_vm8, %v1646_v32, %v1648_v35 }
 0x3e1   :  { %2031 = vmatpush1.bf16.msra.mxu0 %v2030_v36  ;;  %2045 = vmatprep.subr.bf16.mxu1 %v2044_v38  ;;  %v1679_v49 = vmul.f32 %v1662_v40, %v1655_v43 }
 0x3e2   :  { %2047 = vmatpush1.bf16.msra.mxu1 %v2046_v37  ;;  %v1650_v44 = vpop.permute.xlu1 %1649 }
 0x3e3   :  { %v1654_v45 = vsel %vm572_vm8, %v1648_v35, %v1650_v44  ;;  %v1652_v46 = vpop.permute.xlu0 %1651 }
 0x3e4   :  { %v1680_v47 = vmul.f32 %v1666_v39, %v1654_v45  ;;  %v1653_v7 = vsel %vm572_vm8, %v1650_v44, %v1652_v46  ;;  %v1656_v48 = vsel %vm572_vm8, %v1652_v46, %v1646_v32 }
 0x3e5   :  { %v1681_v5 = vmul.f32 %v1670_v41, %v1653_v7  ;;  %v1682_v50 = vmul.f32 %v1674_v42, %v1656_v48 }
 0x3e6   :  { %1753 = vmatprep.subr.mxu0 %v1680_v47 }
 0x3e7   :  { %1754 = vmatpush1.msra.mxu0 %v1679_v49  ;;  %1824 = vmatprep.subr.mxu1 %v1682_v50 }
 0x3e8   :  { %1966 = vmatmul.mubr.msk.f32.vlgmr.msra.gmra.mrb[4].mxu0 %vm1197_vm13, %v1687_v6  ;;  %1825 = vmatpush1.msra.mxu1 %v1681_v5 }
 0x3e9   :  { %1967 = vmatmul.mubr.msk.f32.vlgmr.msra.gmra.mrb[4].mxu1 %vm1197_vm13, %v1687_v6 }
 0x3f3   :  { %v1728_v51 = vpop.permute.xlu1 %1727 }
 0x3f4   :  { %v1733_v52 = vrot.slane %v1728_v51, %v2149_v4 }
 0x4bb   :  { %v1803_v17 = vpop.f32.mrb[4].mxu0 }
 0x4bc   :  { %v1804_v53 = vadd.f32 %v1803_v17, %v1733_v52  ;;  %v1805_v54 = vpop.f32.mrb[5].mxu0  ;;  %v1874_v55 = vpop.f32.mrb[4].mxu1 }
 0x4bd   :  { %v1806_v57 = vadd.f32 %v1805_v54, %v1733_v52  ;;  %v1875_v60 = vadd.f32 %v1874_v55, %v1733_v52  ;;  %v1876_v61 = vpop.f32.mrb[5].mxu1 }
 0x4be   :  { %v1968_v63 = vmul.f32 -1.442695, %v1804_v53  ;;  %v1877_v59 = vadd.f32 %v1876_v61, %v1733_v52 }
 0x4bf   :  { %v1969_v56 = vmul.f32 -1.442695, %v1806_v57  ;;  %v1970_v12 = vmul.f32 -1.442695, %v1875_v60 }
 0x4c0   :  { %2062 = vpow2.f32 %v1968_v63  ;;  %v1971_v58 = vmul.f32 -1.442695, %v1877_v59 }
 0x4c1   :  { %2064 = vpow2.f32 %v1969_v56 }
 0x4c2   :  { %2066 = vpow2.f32 %v1970_v12 }
 0x4c3   :  { %2068 = vpow2.f32 %v1971_v58 }
 0x4ca   :  { %v2063_v62 = vpop.eup %2062 }
 0x4cb   :  { %v2065_v0 = vpop.eup %2064  ;;  %v1891_v1 = vadd.f32 1.0, %v2063_v62 }
 0x4cc   :  { %v2067_v4 = vpop.eup %2066  ;;  %v1892_v2 = vadd.f32 1.0, %v2065_v0 }
 0x4cd   :  { %v2069_v8 = vpop.eup %2068  ;;  %2070 = vrcp.f32 %v1891_v1  ;;  %v1893_v9 = vadd.f32 1.0, %v2067_v4 }
 0x4ce   :  { %2072 = vrcp.f32 %v1892_v2  ;;  %v1894_v10 = vadd.f32 1.0, %v2069_v8 }
 0x4cf   :  { %2074 = vrcp.f32 %v1893_v9 }
 0x4d0   :  { %2076 = vrcp.f32 %v1894_v10 }
 0x4d7   :  { %v2071_v11 = vpop.eup %2070 }
 0x4d8   :  { %v2073_v13 = vpop.eup %2072 }
 0x4d9   :  { %v2075_v14 = vpop.eup %2074  ;;  %v1907_v15 = vcombine.low %v2071_v11, %v2073_v13 }
 0x4da   :  { %v2077_v16 = vpop.eup %2076 }
 0x4db   :  { %v1915_v18 = vrot.slane %v1907_v15, %v2213_v26  ;;  %v1908_v20 = vcombine.low %v2075_v14, %v2077_v16 }
 0x4dd   :  { %v1922_v21 = vrot.slane %v1908_v20, %v2213_v26 }
 0x4df   :  { %v1923_v22 = vcombine.low %v1915_v18, %v1922_v21 }
 0x4e1   :  { %v1930_v23 = vrot.slane %v1923_v22, %v2213_v26 }
 0x4e3   :  { %1932 = vst.msk [vmem:[%s2819_s8] sm:$0xf] %vm2142_vm0, %v1930_v23 }

</bundles_post_ra>
